<compile_context>
chip_gen: v6e
topology: v6e:2x2x1
jax: 0.10.0
libtpu: 0.0.40
codegen_flags: <defaults>
</compile_context>

<pallas_src>
import math

import jax
import jax.numpy as jnp
from jax.experimental import pallas as pl
from jax.experimental.pallas import tpu as pltpu

# --- Config (matches nn.TransformerEncoderLayer / module defaults) -----------
INPUT_DIM = 8
MODEL_DIM = 64          # model_dim default
NUM_HEADS = 4           # num_heads default
HEAD_DIM = MODEL_DIM // NUM_HEADS
NUM_LAYERS = 2          # num_layers default
FF_DIM = 2048           # nn.TransformerEncoderLayer default dim_feedforward
LN_EPS = 1e-5           # default layer_norm_eps
BATCH = 2
SEQ = 8
TOKENS = BATCH * SEQ


def _layer_norm(x, w, b):
    mu = jnp.mean(x, axis=-1, keepdims=True)
    var = jnp.mean((x - mu) ** 2, axis=-1, keepdims=True)
    return (x - mu) * jax.lax.rsqrt(var + LN_EPS) * w + b


def transformer_kernel(
    x_ref, pe_ref,
    fcwt_ref, fcb_ref,
    inwt_ref, inb_ref, outwt_ref, outb_ref,
    ln1w_ref, ln1b_ref,
    w1t_ref, b1_ref, w2t_ref, b2_ref,
    ln2w_ref, ln2b_ref,
    headwt_ref, headb_ref,
    o_ref,
    h_ref,                       # persistent VMEM scratch, (TOKENS, MODEL_DIM) f32
):
    l = pl.program_id(0)
    scale = 1.0 / math.sqrt(HEAD_DIM)

    # --- first grid step: input_fc + positional encoding -> persistent h ----
    @pl.when(l == 0)
    def _():
        h0 = jnp.dot(x_ref[...].astype(jnp.bfloat16), fcwt_ref[...],
                     preferred_element_type=jnp.float32) + fcb_ref[...]
        h_ref[...] = h0 + pe_ref[...]                                  # (BS, D)

    h = h_ref[...]                                                     # (BS, D) f32
    h_bf = h.astype(jnp.bfloat16)

    # --- multi-head self-attention (bf16 weights, f32 accumulate) -----------
    qkv = jnp.dot(h_bf, inwt_ref[...],
                  preferred_element_type=jnp.float32) + inb_ref[...]   # (BS, 3D)
    qkv3 = qkv.reshape(BATCH, SEQ, 3 * MODEL_DIM)                      # (B, S, 3D)

    heads = []
    for hh in range(NUM_HEADS):
        qs = hh * HEAD_DIM
        ks = MODEL_DIM + hh * HEAD_DIM
        vs = 2 * MODEL_DIM + hh * HEAD_DIM
        q = qkv3[:, :, qs:qs + HEAD_DIM]                               # (B, S, Dh)
        k = qkv3[:, :, ks:ks + HEAD_DIM]
        v = qkv3[:, :, vs:vs + HEAD_DIM]
        # batched over B in one dot_general (flash-attention pattern)
        s = jnp.einsum('bqd,bkd->bqk', q, k,
                       preferred_element_type=jnp.float32) * scale     # (B, S, S)
        s = s - jnp.max(s, axis=-1, keepdims=True)
        p = jnp.exp(s)
        # divide -> EUP reciprocal (free slot)
        p = p * pl.reciprocal(jnp.sum(p, axis=-1, keepdims=True), approx=True)
        heads.append(jnp.einsum('bqk,bkd->bqd', p, v,
                                preferred_element_type=jnp.float32))

    a = jnp.concatenate(heads, axis=-1).reshape(TOKENS, MODEL_DIM)     # (BS, D)
    a = jnp.dot(a.astype(jnp.bfloat16), outwt_ref[...],
                preferred_element_type=jnp.float32) + outb_ref[...]
    h = _layer_norm(h + a, ln1w_ref[...], ln1b_ref[...])

    # --- feed-forward (pre-transposed bf16 weights, ReLU) --------------------
    ff = jnp.dot(h.astype(jnp.bfloat16), w1t_ref[...],
                 preferred_element_type=jnp.float32) + b1_ref[...]     # (BS, FF)
    ff = jnp.maximum(ff, 0.0)
    ff = jnp.dot(ff.astype(jnp.bfloat16), w2t_ref[...],
                 preferred_element_type=jnp.float32) + b2_ref[...]     # (BS, D)
    h = _layer_norm(h + ff, ln2w_ref[...], ln2b_ref[...])
    h_ref[...] = h

    # --- last grid step: last timestep per batch, fused short/long heads ----
    @pl.when(l == NUM_LAYERS - 1)
    def _():
        last = h.reshape(BATCH, SEQ, MODEL_DIM)[:, SEQ - 1:SEQ, :]
        last = last.reshape(BATCH, MODEL_DIM)                          # (B, D)
        o_ref[...] = jnp.dot(last.astype(jnp.bfloat16), headwt_ref[...],
                             preferred_element_type=jnp.float32) + headb_ref[...]


def make_params(key):
    """Parameters in PyTorch (out_features, in_features) convention."""
    ks = jax.random.split(key, 16)
    n = lambda k, shape, s=0.05: (jax.random.normal(k, shape, jnp.float32) * s)
    return dict(
        fcw=n(ks[0], (MODEL_DIM, INPUT_DIM)),
        fcb=n(ks[1], (1, MODEL_DIM)),
        inw=n(ks[2], (NUM_LAYERS, 3 * MODEL_DIM, MODEL_DIM)),
        inb=n(ks[3], (NUM_LAYERS, 1, 3 * MODEL_DIM)),
        outw=n(ks[4], (NUM_LAYERS, MODEL_DIM, MODEL_DIM)),
        outb=n(ks[5], (NUM_LAYERS, 1, MODEL_DIM)),
        ln1w=jnp.ones((NUM_LAYERS, 1, MODEL_DIM), jnp.float32),
        ln1b=jnp.zeros((NUM_LAYERS, 1, MODEL_DIM), jnp.float32),
        w1=n(ks[6], (NUM_LAYERS, FF_DIM, MODEL_DIM), 0.02),
        b1=n(ks[7], (NUM_LAYERS, 1, FF_DIM)),
        w2=n(ks[8], (NUM_LAYERS, MODEL_DIM, FF_DIM), 0.02),
        b2=n(ks[9], (NUM_LAYERS, 1, MODEL_DIM)),
        ln2w=jnp.ones((NUM_LAYERS, 1, MODEL_DIM), jnp.float32),
        ln2b=jnp.zeros((NUM_LAYERS, 1, MODEL_DIM), jnp.float32),
        hsw=n(ks[10], (2, MODEL_DIM)),
        hsb=n(ks[11], (1, 2)),
        hlw=n(ks[12], (2, MODEL_DIM)),
        hlb=n(ks[13], (1, 2)),
    )


def positional_encoding(seq_len, d_model):
    pos = jnp.arange(seq_len, dtype=jnp.float32)[:, None]
    div = jnp.exp(jnp.arange(0, d_model, 2, dtype=jnp.float32)
                  * (-math.log(10000.0) / d_model))
    pe = jnp.zeros((seq_len, d_model), jnp.float32)
    pe = pe.at[:, 0::2].set(jnp.sin(pos * div))
    pe = pe.at[:, 1::2].set(jnp.cos(pos * div))
    return pe


def prepare_params(params):
    """One-time host-side layout prep: transpose matmul weights to (K, N),
    cast them to bf16 (halves HBM weight traffic; accumulation stays f32
    in-kernel), tile the positional encoding over batch, and fuse the
    head_short / head_long projections into one (D, 4) matmul."""
    bf = jnp.bfloat16
    pe = positional_encoding(SEQ, MODEL_DIM)
    return dict(
        pe2=jnp.tile(pe, (BATCH, 1)),                                    # (BS, D) f32
        fcwt=params["fcw"].T.astype(bf),                                 # (Din, D)
        fcb=params["fcb"],
        inwt=jnp.transpose(params["inw"], (0, 2, 1)).astype(bf),         # (L, D, 3D)
        inb=params["inb"],
        outwt=jnp.transpose(params["outw"], (0, 2, 1)).astype(bf),       # (L, D, D)
        outb=params["outb"],
        ln1w=params["ln1w"], ln1b=params["ln1b"],
        w1t=jnp.transpose(params["w1"], (0, 2, 1)).astype(bf),           # (L, D, FF)
        b1=params["b1"],
        w2t=jnp.transpose(params["w2"], (0, 2, 1)).astype(bf),           # (L, FF, D)
        b2=params["b2"],
        ln2w=params["ln2w"], ln2b=params["ln2b"],
        headwt=jnp.concatenate([params["hsw"], params["hlw"]],
                               axis=0).T.astype(bf),                     # (D, 4)
        headb=jnp.concatenate([params["hsb"], params["hlb"]], axis=-1),  # (1, 4)
    )


def _const_spec(shape):
    # Layer-invariant tensor: constant block index -> DMA'd once, stays resident.
    return pl.BlockSpec(shape, lambda l: (0, 0))


def _layer_spec(d1, d2):
    # Per-layer tensor: block index follows the layer grid axis -> Pallas
    # double-buffers layer l+1's weight fetch under layer l's compute.
    return pl.BlockSpec((None, d1, d2), lambda l: (l, 0, 0))


@jax.jit
def time_series_multi_transformer(x, prep):
    x2 = x.reshape(TOKENS, INPUT_DIM)       # fold batch into token axis (free)
    args = (
        x2, prep["pe2"],
        prep["fcwt"], prep["fcb"],
        prep["inwt"], prep["inb"], prep["outwt"], prep["outb"],
        prep["ln1w"], prep["ln1b"],
        prep["w1t"], prep["b1"], prep["w2t"], prep["b2"],
        prep["ln2w"], prep["ln2b"],
        prep["headwt"], prep["headb"],
    )
    grid_spec = pltpu.PrefetchScalarGridSpec(
        num_scalar_prefetch=0,
        grid=(NUM_LAYERS,),
        in_specs=[
            _const_spec((TOKENS, INPUT_DIM)),             # x2
            _const_spec((TOKENS, MODEL_DIM)),             # pe2
            _const_spec((INPUT_DIM, MODEL_DIM)),          # fcwt
            _const_spec((1, MODEL_DIM)),                  # fcb
            _layer_spec(MODEL_DIM, 3 * MODEL_DIM),        # inwt
            _layer_spec(1, 3 * MODEL_DIM),                # inb
            _layer_spec(MODEL_DIM, MODEL_DIM),            # outwt
            _layer_spec(1, MODEL_DIM),                    # outb
            _layer_spec(1, MODEL_DIM),                    # ln1w
            _layer_spec(1, MODEL_DIM),                    # ln1b
            _layer_spec(MODEL_DIM, FF_DIM),               # w1t
            _layer_spec(1, FF_DIM),                       # b1
            _layer_spec(FF_DIM, MODEL_DIM),               # w2t
            _layer_spec(1, MODEL_DIM),                    # b2
            _layer_spec(1, MODEL_DIM),                    # ln2w
            _layer_spec(1, MODEL_DIM),                    # ln2b
            _const_spec((MODEL_DIM, 4)),                  # headwt (fused heads)
            _const_spec((1, 4)),                          # headb
        ],
        out_specs=pl.BlockSpec((BATCH, 4), lambda l: (0, 0)),
        scratch_shapes=[pltpu.VMEM((TOKENS, MODEL_DIM), jnp.float32)],
    )
    return pl.pallas_call(
        transformer_kernel,
        out_shape=jax.ShapeDtypeStruct((BATCH, 4), jnp.float32),
        grid_spec=grid_spec,
        compiler_params=pltpu.CompilerParams(
            dimension_semantics=("arbitrary",),   # layer axis is sequential
            vmem_limit_bytes=16 << 20,            # ~1.5 MiB actual; safe on v7x too
        ),
    )(*args)


if __name__ == "__main__":
    key = jax.random.PRNGKey(0)
    kx, kp = jax.random.split(key)
    x = jax.random.normal(kx, (BATCH, SEQ, INPUT_DIM), jnp.float32)
    params = make_params(kp)
    prep = prepare_params(params)        # host-side, one-time layout prep
    out = time_series_multi_transformer(x, prep)
    jax.block_until_ready(out)
    assert out.shape == (BATCH, 4) and out.dtype == jnp.float32
    assert bool(jnp.all(jnp.isfinite(out)))
    print("KERNEL_OK")
</pallas_src>

<mosaic_0001>
module attributes {stable_mosaic.version = 11 : i64} {
  func.func @transformer_kernel(%arg0: i32, %arg1: memref<16x8xf32, #tpu.memory_space<vmem>>, %arg2: memref<16x64xf32, #tpu.memory_space<vmem>>, %arg3: memref<8x64xbf16, #tpu.memory_space<vmem>>, %arg4: memref<1x64xf32, #tpu.memory_space<vmem>>, %arg5: memref<1x64x192xbf16, #tpu.memory_space<vmem>>, %arg6: memref<1x1x192xf32, #tpu.memory_space<vmem>>, %arg7: memref<1x64x64xbf16, #tpu.memory_space<vmem>>, %arg8: memref<1x1x64xf32, #tpu.memory_space<vmem>>, %arg9: memref<1x1x64xf32, #tpu.memory_space<vmem>>, %arg10: memref<1x1x64xf32, #tpu.memory_space<vmem>>, %arg11: memref<1x64x2048xbf16, #tpu.memory_space<vmem>>, %arg12: memref<1x1x2048xf32, #tpu.memory_space<vmem>>, %arg13: memref<1x2048x64xbf16, #tpu.memory_space<vmem>>, %arg14: memref<1x1x64xf32, #tpu.memory_space<vmem>>, %arg15: memref<1x1x64xf32, #tpu.memory_space<vmem>>, %arg16: memref<1x1x64xf32, #tpu.memory_space<vmem>>, %arg17: memref<64x4xbf16, #tpu.memory_space<vmem>>, %arg18: memref<1x4xf32, #tpu.memory_space<vmem>>, %arg19: memref<2x4xf32, #tpu.memory_space<vmem>>, %arg20: memref<16x64xf32, #tpu.memory_space<vmem>>) attributes {dimension_semantics = [#tpu.dimension_semantics<arbitrary>], iteration_bounds = array<i64: 2>, scalar_prefetch = 0 : i64, scratch_operands = 1 : i64, tpu.core_type = #tpu.core_type<tc>, window_params = [{pipeline_mode = #tpu.pipeline_mode<synchronous>, transform_indices = @transform_0, window_bounds = array<i64: 16, 8>}, {pipeline_mode = #tpu.pipeline_mode<synchronous>, transform_indices = @transform_1, window_bounds = array<i64: 16, 64>}, {pipeline_mode = #tpu.pipeline_mode<synchronous>, transform_indices = @transform_2, window_bounds = array<i64: 8, 64>}, {pipeline_mode = #tpu.pipeline_mode<synchronous>, transform_indices = @transform_3, window_bounds = array<i64: 1, 64>}, {transform_indices = @transform_4, window_bounds = array<i64: 1, 64, 192>}, {transform_indices = @transform_5, window_bounds = array<i64: 1, 1, 192>}, {transform_indices = @transform_6, window_bounds = array<i64: 1, 64, 64>}, {transform_indices = @transform_7, window_bounds = array<i64: 1, 1, 64>}, {transform_indices = @transform_8, window_bounds = array<i64: 1, 1, 64>}, {transform_indices = @transform_9, window_bounds = array<i64: 1, 1, 64>}, {transform_indices = @transform_10, window_bounds = array<i64: 1, 64, 2048>}, {transform_indices = @transform_11, window_bounds = array<i64: 1, 1, 2048>}, {transform_indices = @transform_12, window_bounds = array<i64: 1, 2048, 64>}, {transform_indices = @transform_13, window_bounds = array<i64: 1, 1, 64>}, {transform_indices = @transform_14, window_bounds = array<i64: 1, 1, 64>}, {transform_indices = @transform_15, window_bounds = array<i64: 1, 1, 64>}, {pipeline_mode = #tpu.pipeline_mode<synchronous>, transform_indices = @transform_16, window_bounds = array<i64: 64, 4>}, {pipeline_mode = #tpu.pipeline_mode<synchronous>, transform_indices = @transform_17, window_bounds = array<i64: 1, 4>}, {pipeline_mode = #tpu.pipeline_mode<synchronous>, transform_indices = @transform_18, window_bounds = array<i64: 2, 4>}]} {
    %c0_i32 = arith.constant 0 : i32
    %0 = arith.cmpi eq, %arg0, %c0_i32 : i32
    %1 = arith.extui %0 : i1 to i32
    %c0_i32_0 = arith.constant 0 : i32
    %2 = arith.cmpi ne, %1, %c0_i32_0 : i32
    scf.if %2 {
      %c0_75 = arith.constant 0 : index
      %c0_76 = arith.constant 0 : index
      %167 = vector.load %arg1[%c0_75, %c0_76] : memref<16x8xf32, #tpu.memory_space<vmem>>, vector<16x8xf32>
      %168 = arith.truncf %167 : vector<16x8xf32> to vector<16x8xbf16>
      %c0_77 = arith.constant 0 : index
      %c0_78 = arith.constant 0 : index
      %169 = vector.load %arg3[%c0_77, %c0_78] : memref<8x64xbf16, #tpu.memory_space<vmem>>, vector<8x64xbf16>
      %cst_79 = arith.constant dense<0.000000e+00> : vector<16x64xf32>
      %170 = tpu.matmul %168, %169, %cst_79 {dimension_numbers = #tpu.dot_dimension_numbers<[1], [0], [0], [1], [0, 0, 1, 1], [], []>} : vector<16x8xbf16>, vector<8x64xbf16>, vector<16x64xf32> -> vector<16x64xf32>
      %c0_80 = arith.constant 0 : index
      %c0_81 = arith.constant 0 : index
      %171 = vector.load %arg4[%c0_80, %c0_81] : memref<1x64xf32, #tpu.memory_space<vmem>>, vector<1x64xf32>
      %172 = vector.broadcast %171 : vector<1x64xf32> to vector<16x64xf32>
      %173 = arith.addf %170, %172 : vector<16x64xf32>
      %c0_82 = arith.constant 0 : index
      %c0_83 = arith.constant 0 : index
      %174 = vector.load %arg2[%c0_82, %c0_83] : memref<16x64xf32, #tpu.memory_space<vmem>>, vector<16x64xf32>
      %175 = arith.addf %173, %174 : vector<16x64xf32>
      %c0_84 = arith.constant 0 : index
      %c0_85 = arith.constant 0 : index
      %176 = vector.load %arg20[%c0_84, %c0_85] : memref<16x64xf32, #tpu.memory_space<vmem>>, vector<16x64xf32>
      tpu.vector_store %arg20[%c0_84, %c0_85], %175 {strides = array<i32>} : memref<16x64xf32, #tpu.memory_space<vmem>>, vector<16x64xf32>,
    } else {
    }
    %c0 = arith.constant 0 : index
    %c0_1 = arith.constant 0 : index
    %3 = vector.load %arg20[%c0, %c0_1] : memref<16x64xf32, #tpu.memory_space<vmem>>, vector<16x64xf32>
    %4 = arith.truncf %3 : vector<16x64xf32> to vector<16x64xbf16>
    %c0_2 = arith.constant 0 : index
    %c0_3 = arith.constant 0 : index
    %c0_4 = arith.constant 0 : index
    %5 = vector.load %arg5[%c0_2, %c0_3, %c0_4] : memref<1x64x192xbf16, #tpu.memory_space<vmem>>, vector<1x64x192xbf16>
    %6 = vector.shape_cast %5 : vector<1x64x192xbf16> to vector<64x192xbf16>
    %cst = arith.constant dense<0.000000e+00> : vector<16x192xf32>
    %7 = tpu.matmul %4, %6, %cst {dimension_numbers = #tpu.dot_dimension_numbers<[1], [0], [0], [1], [0, 0, 1, 1], [], []>} : vector<16x64xbf16>, vector<64x192xbf16>, vector<16x192xf32> -> vector<16x192xf32>
    %c0_5 = arith.constant 0 : index
    %c0_6 = arith.constant 0 : index
    %c0_7 = arith.constant 0 : index
    %8 = vector.load %arg6[%c0_5, %c0_6, %c0_7] : memref<1x1x192xf32, #tpu.memory_space<vmem>>, vector<1x1x192xf32>
    %9 = vector.shape_cast %8 : vector<1x1x192xf32> to vector<1x192xf32>
    %10 = vector.broadcast %9 : vector<1x192xf32> to vector<16x192xf32>
    %11 = arith.addf %7, %10 : vector<16x192xf32>
    %12 = vector.shape_cast %11 : vector<16x192xf32> to vector<2x8x192xf32>
    %13 = vector.extract_strided_slice %12 {offsets = [0, 0, 0], sizes = [2, 8, 16], strides = [1, 1, 1]} : vector<2x8x192xf32> to vector<2x8x16xf32>
    %14 = vector.extract_strided_slice %12 {offsets = [0, 0, 64], sizes = [2, 8, 16], strides = [1, 1, 1]} : vector<2x8x192xf32> to vector<2x8x16xf32>
    %15 = vector.extract_strided_slice %12 {offsets = [0, 0, 128], sizes = [2, 8, 16], strides = [1, 1, 1]} : vector<2x8x192xf32> to vector<2x8x16xf32>
    "tpu.trace_start"() <{level = 10 : i32, message = "bqd,bkd->bqk"}> : () -> ()
    %cst_8 = arith.constant dense<0.000000e+00> : vector<2x8x8xf32>
    %16 = tpu.matmul %13, %14, %cst_8 {dimension_numbers = #tpu.dot_dimension_numbers<[2], [2], [1], [1], [0, 0, 0, 1, 1, 1], [0], [0]>} : vector<2x8x16xf32>, vector<2x8x16xf32>, vector<2x8x8xf32> -> vector<2x8x8xf32>
    "tpu.trace_stop"() : () -> ()
    %cst_9 = arith.constant 2.500000e-01 : f32
    %17 = vector.broadcast %cst_9 : f32 to vector<2x8x8xf32>
    %18 = arith.mulf %16, %17 : vector<2x8x8xf32>
    %cst_10 = arith.constant dense<0xFF800000> : vector<2x8xf32>
    %19 = vector.multi_reduction <maximumf>, %18, %cst_10 [2] : vector<2x8x8xf32> to vector<2x8xf32>
    %20 = vector.shape_cast %19 : vector<2x8xf32> to vector<2x8x1xf32>
    %21 = vector.broadcast %20 : vector<2x8x1xf32> to vector<2x8x8xf32>
    %22 = arith.subf %18, %21 : vector<2x8x8xf32>
    %23 = math.exp %22 : vector<2x8x8xf32>
    %cst_11 = arith.constant dense<0.000000e+00> : vector<2x8xf32>
    %24 = vector.multi_reduction <add>, %23, %cst_11 [2] : vector<2x8x8xf32> to vector<2x8xf32>
    %25 = vector.shape_cast %24 : vector<2x8xf32> to vector<2x8x1xf32>
    %26 = tpu.reciprocal %25 {approx = true} : vector<2x8x1xf32> -> vector<2x8x1xf32>
    %27 = vector.broadcast %26 : vector<2x8x1xf32> to vector<2x8x8xf32>
    %28 = arith.mulf %23, %27 : vector<2x8x8xf32>
    "tpu.trace_start"() <{level = 10 : i32, message = "bqk,bkd->bqd"}> : () -> ()
    %cst_12 = arith.constant dense<0.000000e+00> : vector<2x8x16xf32>
    %29 = tpu.matmul %28, %15, %cst_12 {dimension_numbers = #tpu.dot_dimension_numbers<[2], [1], [1], [2], [0, 0, 0, 1, 1, 2], [0], [0]>} : vector<2x8x8xf32>, vector<2x8x16xf32>, vector<2x8x16xf32> -> vector<2x8x16xf32>
    "tpu.trace_stop"() : () -> ()
    %30 = vector.extract_strided_slice %12 {offsets = [0, 0, 16], sizes = [2, 8, 16], strides = [1, 1, 1]} : vector<2x8x192xf32> to vector<2x8x16xf32>
    %31 = vector.extract_strided_slice %12 {offsets = [0, 0, 80], sizes = [2, 8, 16], strides = [1, 1, 1]} : vector<2x8x192xf32> to vector<2x8x16xf32>
    %32 = vector.extract_strided_slice %12 {offsets = [0, 0, 144], sizes = [2, 8, 16], strides = [1, 1, 1]} : vector<2x8x192xf32> to vector<2x8x16xf32>
    "tpu.trace_start"() <{level = 10 : i32, message = "bqd,bkd->bqk"}> : () -> ()
    %cst_13 = arith.constant dense<0.000000e+00> : vector<2x8x8xf32>
    %33 = tpu.matmul %30, %31, %cst_13 {dimension_numbers = #tpu.dot_dimension_numbers<[2], [2], [1], [1], [0, 0, 0, 1, 1, 1], [0], [0]>} : vector<2x8x16xf32>, vector<2x8x16xf32>, vector<2x8x8xf32> -> vector<2x8x8xf32>
    "tpu.trace_stop"() : () -> ()
    %cst_14 = arith.constant 2.500000e-01 : f32
    %34 = vector.broadcast %cst_14 : f32 to vector<2x8x8xf32>
    %35 = arith.mulf %33, %34 : vector<2x8x8xf32>
    %cst_15 = arith.constant dense<0xFF800000> : vector<2x8xf32>
    %36 = vector.multi_reduction <maximumf>, %35, %cst_15 [2] : vector<2x8x8xf32> to vector<2x8xf32>
    %37 = vector.shape_cast %36 : vector<2x8xf32> to vector<2x8x1xf32>
    %38 = vector.broadcast %37 : vector<2x8x1xf32> to vector<2x8x8xf32>
    %39 = arith.subf %35, %38 : vector<2x8x8xf32>
    %40 = math.exp %39 : vector<2x8x8xf32>
    %cst_16 = arith.constant dense<0.000000e+00> : vector<2x8xf32>
    %41 = vector.multi_reduction <add>, %40, %cst_16 [2] : vector<2x8x8xf32> to vector<2x8xf32>
    %42 = vector.shape_cast %41 : vector<2x8xf32> to vector<2x8x1xf32>
    %43 = tpu.reciprocal %42 {approx = true} : vector<2x8x1xf32> -> vector<2x8x1xf32>
    %44 = vector.broadcast %43 : vector<2x8x1xf32> to vector<2x8x8xf32>
    %45 = arith.mulf %40, %44 : vector<2x8x8xf32>
    "tpu.trace_start"() <{level = 10 : i32, message = "bqk,bkd->bqd"}> : () -> ()
    %cst_17 = arith.constant dense<0.000000e+00> : vector<2x8x16xf32>
    %46 = tpu.matmul %45, %32, %cst_17 {dimension_numbers = #tpu.dot_dimension_numbers<[2], [1], [1], [2], [0, 0, 0, 1, 1, 2], [0], [0]>} : vector<2x8x8xf32>, vector<2x8x16xf32>, vector<2x8x16xf32> -> vector<2x8x16xf32>
    "tpu.trace_stop"() : () -> ()
    %47 = vector.extract_strided_slice %12 {offsets = [0, 0, 32], sizes = [2, 8, 16], strides = [1, 1, 1]} : vector<2x8x192xf32> to vector<2x8x16xf32>
    %48 = vector.extract_strided_slice %12 {offsets = [0, 0, 96], sizes = [2, 8, 16], strides = [1, 1, 1]} : vector<2x8x192xf32> to vector<2x8x16xf32>
    %49 = vector.extract_strided_slice %12 {offsets = [0, 0, 160], sizes = [2, 8, 16], strides = [1, 1, 1]} : vector<2x8x192xf32> to vector<2x8x16xf32>
    "tpu.trace_start"() <{level = 10 : i32, message = "bqd,bkd->bqk"}> : () -> ()
    %cst_18 = arith.constant dense<0.000000e+00> : vector<2x8x8xf32>
    %50 = tpu.matmul %47, %48, %cst_18 {dimension_numbers = #tpu.dot_dimension_numbers<[2], [2], [1], [1], [0, 0, 0, 1, 1, 1], [0], [0]>} : vector<2x8x16xf32>, vector<2x8x16xf32>, vector<2x8x8xf32> -> vector<2x8x8xf32>
    "tpu.trace_stop"() : () -> ()
    %cst_19 = arith.constant 2.500000e-01 : f32
    %51 = vector.broadcast %cst_19 : f32 to vector<2x8x8xf32>
    %52 = arith.mulf %50, %51 : vector<2x8x8xf32>
    %cst_20 = arith.constant dense<0xFF800000> : vector<2x8xf32>
    %53 = vector.multi_reduction <maximumf>, %52, %cst_20 [2] : vector<2x8x8xf32> to vector<2x8xf32>
    %54 = vector.shape_cast %53 : vector<2x8xf32> to vector<2x8x1xf32>
    %55 = vector.broadcast %54 : vector<2x8x1xf32> to vector<2x8x8xf32>
    %56 = arith.subf %52, %55 : vector<2x8x8xf32>
    %57 = math.exp %56 : vector<2x8x8xf32>
    %cst_21 = arith.constant dense<0.000000e+00> : vector<2x8xf32>
    %58 = vector.multi_reduction <add>, %57, %cst_21 [2] : vector<2x8x8xf32> to vector<2x8xf32>
    %59 = vector.shape_cast %58 : vector<2x8xf32> to vector<2x8x1xf32>
    %60 = tpu.reciprocal %59 {approx = true} : vector<2x8x1xf32> -> vector<2x8x1xf32>
    %61 = vector.broadcast %60 : vector<2x8x1xf32> to vector<2x8x8xf32>
    %62 = arith.mulf %57, %61 : vector<2x8x8xf32>
    "tpu.trace_start"() <{level = 10 : i32, message = "bqk,bkd->bqd"}> : () -> ()
    %cst_22 = arith.constant dense<0.000000e+00> : vector<2x8x16xf32>
    %63 = tpu.matmul %62, %49, %cst_22 {dimension_numbers = #tpu.dot_dimension_numbers<[2], [1], [1], [2], [0, 0, 0, 1, 1, 2], [0], [0]>} : vector<2x8x8xf32>, vector<2x8x16xf32>, vector<2x8x16xf32> -> vector<2x8x16xf32>
    "tpu.trace_stop"() : () -> ()
    %64 = vector.extract_strided_slice %12 {offsets = [0, 0, 48], sizes = [2, 8, 16], strides = [1, 1, 1]} : vector<2x8x192xf32> to vector<2x8x16xf32>
    %65 = vector.extract_strided_slice %12 {offsets = [0, 0, 112], sizes = [2, 8, 16], strides = [1, 1, 1]} : vector<2x8x192xf32> to vector<2x8x16xf32>
    %66 = vector.extract_strided_slice %12 {offsets = [0, 0, 176], sizes = [2, 8, 16], strides = [1, 1, 1]} : vector<2x8x192xf32> to vector<2x8x16xf32>
    "tpu.trace_start"() <{level = 10 : i32, message = "bqd,bkd->bqk"}> : () -> ()
    %cst_23 = arith.constant dense<0.000000e+00> : vector<2x8x8xf32>
    %67 = tpu.matmul %64, %65, %cst_23 {dimension_numbers = #tpu.dot_dimension_numbers<[2], [2], [1], [1], [0, 0, 0, 1, 1, 1], [0], [0]>} : vector<2x8x16xf32>, vector<2x8x16xf32>, vector<2x8x8xf32> -> vector<2x8x8xf32>
    "tpu.trace_stop"() : () -> ()
    %cst_24 = arith.constant 2.500000e-01 : f32
    %68 = vector.broadcast %cst_24 : f32 to vector<2x8x8xf32>
    %69 = arith.mulf %67, %68 : vector<2x8x8xf32>
    %cst_25 = arith.constant dense<0xFF800000> : vector<2x8xf32>
    %70 = vector.multi_reduction <maximumf>, %69, %cst_25 [2] : vector<2x8x8xf32> to vector<2x8xf32>
    %71 = vector.shape_cast %70 : vector<2x8xf32> to vector<2x8x1xf32>
    %72 = vector.broadcast %71 : vector<2x8x1xf32> to vector<2x8x8xf32>
    %73 = arith.subf %69, %72 : vector<2x8x8xf32>
    %74 = math.exp %73 : vector<2x8x8xf32>
    %cst_26 = arith.constant dense<0.000000e+00> : vector<2x8xf32>
    %75 = vector.multi_reduction <add>, %74, %cst_26 [2] : vector<2x8x8xf32> to vector<2x8xf32>
    %76 = vector.shape_cast %75 : vector<2x8xf32> to vector<2x8x1xf32>
    %77 = tpu.reciprocal %76 {approx = true} : vector<2x8x1xf32> -> vector<2x8x1xf32>
    %78 = vector.broadcast %77 : vector<2x8x1xf32> to vector<2x8x8xf32>
    %79 = arith.mulf %74, %78 : vector<2x8x8xf32>
    "tpu.trace_start"() <{level = 10 : i32, message = "bqk,bkd->bqd"}> : () -> ()
    %cst_27 = arith.constant dense<0.000000e+00> : vector<2x8x16xf32>
    %80 = tpu.matmul %79, %66, %cst_27 {dimension_numbers = #tpu.dot_dimension_numbers<[2], [1], [1], [2], [0, 0, 0, 1, 1, 2], [0], [0]>} : vector<2x8x8xf32>, vector<2x8x16xf32>, vector<2x8x16xf32> -> vector<2x8x16xf32>
    "tpu.trace_stop"() : () -> ()
    %81 = tpu.concatenate %29, %46, %63, %80 in 2 : vector<2x8x16xf32>, vector<2x8x16xf32>, vector<2x8x16xf32>, vector<2x8x16xf32> -> vector<2x8x64xf32>
    %82 = vector.shape_cast %81 : vector<2x8x64xf32> to vector<16x64xf32>
    %83 = arith.truncf %82 : vector<16x64xf32> to vector<16x64xbf16>
    %c0_28 = arith.constant 0 : index
    %c0_29 = arith.constant 0 : index
    %c0_30 = arith.constant 0 : index
    %84 = vector.load %arg7[%c0_28, %c0_29, %c0_30] : memref<1x64x64xbf16, #tpu.memory_space<vmem>>, vector<1x64x64xbf16>
    %85 = vector.shape_cast %84 : vector<1x64x64xbf16> to vector<64x64xbf16>
    %cst_31 = arith.constant dense<0.000000e+00> : vector<16x64xf32>
    %86 = tpu.matmul %83, %85, %cst_31 {dimension_numbers = #tpu.dot_dimension_numbers<[1], [0], [0], [1], [0, 0, 1, 1], [], []>} : vector<16x64xbf16>, vector<64x64xbf16>, vector<16x64xf32> -> vector<16x64xf32>
    %c0_32 = arith.constant 0 : index
    %c0_33 = arith.constant 0 : index
    %c0_34 = arith.constant 0 : index
    %87 = vector.load %arg8[%c0_32, %c0_33, %c0_34] : memref<1x1x64xf32, #tpu.memory_space<vmem>>, vector<1x1x64xf32>
    %88 = vector.shape_cast %87 : vector<1x1x64xf32> to vector<1x64xf32>
    %89 = vector.broadcast %88 : vector<1x64xf32> to vector<16x64xf32>
    %90 = arith.addf %86, %89 : vector<16x64xf32>
    %91 = arith.addf %3, %90 : vector<16x64xf32>
    %c0_35 = arith.constant 0 : index
    %c0_36 = arith.constant 0 : index
    %c0_37 = arith.constant 0 : index
    %92 = vector.load %arg9[%c0_35, %c0_36, %c0_37] : memref<1x1x64xf32, #tpu.memory_space<vmem>>, vector<1x1x64xf32>
    %93 = vector.shape_cast %92 : vector<1x1x64xf32> to vector<1x64xf32>
    %c0_38 = arith.constant 0 : index
    %c0_39 = arith.constant 0 : index
    %c0_40 = arith.constant 0 : index
    %94 = vector.load %arg10[%c0_38, %c0_39, %c0_40] : memref<1x1x64xf32, #tpu.memory_space<vmem>>, vector<1x1x64xf32>
    %95 = vector.shape_cast %94 : vector<1x1x64xf32> to vector<1x64xf32>
    %cst_41 = arith.constant dense<0.000000e+00> : vector<16xf32>
    %96 = vector.multi_reduction <add>, %91, %cst_41 [1] : vector<16x64xf32> to vector<16xf32>
    %97 = vector.shape_cast %96 : vector<16xf32> to vector<16x1xf32>
    %cst_42 = arith.constant 6.400000e+01 : f32
    %98 = vector.broadcast %cst_42 : f32 to vector<16x1xf32>
    %99 = arith.divf %97, %98 : vector<16x1xf32>
    %100 = vector.broadcast %99 : vector<16x1xf32> to vector<16x64xf32>
    %101 = arith.subf %91, %100 : vector<16x64xf32>
    %102 = arith.mulf %101, %101 : vector<16x64xf32>
    %cst_43 = arith.constant dense<0.000000e+00> : vector<16xf32>
    %103 = vector.multi_reduction <add>, %102, %cst_43 [1] : vector<16x64xf32> to vector<16xf32>
    %104 = vector.shape_cast %103 : vector<16xf32> to vector<16x1xf32>
    %cst_44 = arith.constant 6.400000e+01 : f32
    %105 = vector.broadcast %cst_44 : f32 to vector<16x1xf32>
    %106 = arith.divf %104, %105 : vector<16x1xf32>
    %107 = vector.broadcast %99 : vector<16x1xf32> to vector<16x64xf32>
    %108 = arith.subf %91, %107 : vector<16x64xf32>
    %cst_45 = arith.constant 9.99999974E-6 : f32
    %109 = vector.broadcast %cst_45 : f32 to vector<16x1xf32>
    %110 = arith.addf %106, %109 : vector<16x1xf32>
    %111 = math.rsqrt %110 : vector<16x1xf32>
    %112 = vector.broadcast %111 : vector<16x1xf32> to vector<16x64xf32>
    %113 = arith.mulf %108, %112 : vector<16x64xf32>
    %114 = vector.broadcast %93 : vector<1x64xf32> to vector<16x64xf32>
    %115 = arith.mulf %113, %114 : vector<16x64xf32>
    %116 = vector.broadcast %95 : vector<1x64xf32> to vector<16x64xf32>
    %117 = arith.addf %115, %116 : vector<16x64xf32>
    %118 = arith.truncf %117 : vector<16x64xf32> to vector<16x64xbf16>
    %c0_46 = arith.constant 0 : index
    %c0_47 = arith.constant 0 : index
    %c0_48 = arith.constant 0 : index
    %119 = vector.load %arg11[%c0_46, %c0_47, %c0_48] : memref<1x64x2048xbf16, #tpu.memory_space<vmem>>, vector<1x64x2048xbf16>
    %120 = vector.shape_cast %119 : vector<1x64x2048xbf16> to vector<64x2048xbf16>
    %cst_49 = arith.constant dense<0.000000e+00> : vector<16x2048xf32>
    %121 = tpu.matmul %118, %120, %cst_49 {dimension_numbers = #tpu.dot_dimension_numbers<[1], [0], [0], [1], [0, 0, 1, 1], [], []>} : vector<16x64xbf16>, vector<64x2048xbf16>, vector<16x2048xf32> -> vector<16x2048xf32>
    %c0_50 = arith.constant 0 : index
    %c0_51 = arith.constant 0 : index
    %c0_52 = arith.constant 0 : index
    %122 = vector.load %arg12[%c0_50, %c0_51, %c0_52] : memref<1x1x2048xf32, #tpu.memory_space<vmem>>, vector<1x1x2048xf32>
    %123 = vector.shape_cast %122 : vector<1x1x2048xf32> to vector<1x2048xf32>
    %124 = vector.broadcast %123 : vector<1x2048xf32> to vector<16x2048xf32>
    %125 = arith.addf %121, %124 : vector<16x2048xf32>
    %cst_53 = arith.constant 0.000000e+00 : f32
    %126 = vector.broadcast %cst_53 : f32 to vector<16x2048xf32>
    %127 = arith.maximumf %125, %126 : vector<16x2048xf32>
    %128 = arith.truncf %127 : vector<16x2048xf32> to vector<16x2048xbf16>
    %c0_54 = arith.constant 0 : index
    %c0_55 = arith.constant 0 : index
    %c0_56 = arith.constant 0 : index
    %129 = vector.load %arg13[%c0_54, %c0_55, %c0_56] : memref<1x2048x64xbf16, #tpu.memory_space<vmem>>, vector<1x2048x64xbf16>
    %130 = vector.shape_cast %129 : vector<1x2048x64xbf16> to vector<2048x64xbf16>
    %cst_57 = arith.constant dense<0.000000e+00> : vector<16x64xf32>
    %131 = tpu.matmul %128, %130, %cst_57 {dimension_numbers = #tpu.dot_dimension_numbers<[1], [0], [0], [1], [0, 0, 1, 1], [], []>} : vector<16x2048xbf16>, vector<2048x64xbf16>, vector<16x64xf32> -> vector<16x64xf32>
    %c0_58 = arith.constant 0 : index
    %c0_59 = arith.constant 0 : index
    %c0_60 = arith.constant 0 : index
    %132 = vector.load %arg14[%c0_58, %c0_59, %c0_60] : memref<1x1x64xf32, #tpu.memory_space<vmem>>, vector<1x1x64xf32>
    %133 = vector.shape_cast %132 : vector<1x1x64xf32> to vector<1x64xf32>
    %134 = vector.broadcast %133 : vector<1x64xf32> to vector<16x64xf32>
    %135 = arith.addf %131, %134 : vector<16x64xf32>
    %136 = arith.addf %117, %135 : vector<16x64xf32>
    %c0_61 = arith.constant 0 : index
    %c0_62 = arith.constant 0 : index
    %c0_63 = arith.constant 0 : index
    %137 = vector.load %arg15[%c0_61, %c0_62, %c0_63] : memref<1x1x64xf32, #tpu.memory_space<vmem>>, vector<1x1x64xf32>
    %138 = vector.shape_cast %137 : vector<1x1x64xf32> to vector<1x64xf32>
    %c0_64 = arith.constant 0 : index
    %c0_65 = arith.constant 0 : index
    %c0_66 = arith.constant 0 : index
    %139 = vector.load %arg16[%c0_64, %c0_65, %c0_66] : memref<1x1x64xf32, #tpu.memory_space<vmem>>, vector<1x1x64xf32>
    %140 = vector.shape_cast %139 : vector<1x1x64xf32> to vector<1x64xf32>
    %cst_67 = arith.constant dense<0.000000e+00> : vector<16xf32>
    %141 = vector.multi_reduction <add>, %136, %cst_67 [1] : vector<16x64xf32> to vector<16xf32>
    %142 = vector.shape_cast %141 : vector<16xf32> to vector<16x1xf32>
    %cst_68 = arith.constant 6.400000e+01 : f32
    %143 = vector.broadcast %cst_68 : f32 to vector<16x1xf32>
    %144 = arith.divf %142, %143 : vector<16x1xf32>
    %145 = vector.broadcast %144 : vector<16x1xf32> to vector<16x64xf32>
    %146 = arith.subf %136, %145 : vector<16x64xf32>
    %147 = arith.mulf %146, %146 : vector<16x64xf32>
    %cst_69 = arith.constant dense<0.000000e+00> : vector<16xf32>
    %148 = vector.multi_reduction <add>, %147, %cst_69 [1] : vector<16x64xf32> to vector<16xf32>
    %149 = vector.shape_cast %148 : vector<16xf32> to vector<16x1xf32>
    %cst_70 = arith.constant 6.400000e+01 : f32
    %150 = vector.broadcast %cst_70 : f32 to vector<16x1xf32>
    %151 = arith.divf %149, %150 : vector<16x1xf32>
    %152 = vector.broadcast %144 : vector<16x1xf32> to vector<16x64xf32>
    %153 = arith.subf %136, %152 : vector<16x64xf32>
    %cst_71 = arith.constant 9.99999974E-6 : f32
    %154 = vector.broadcast %cst_71 : f32 to vector<16x1xf32>
    %155 = arith.addf %151, %154 : vector<16x1xf32>
    %156 = math.rsqrt %155 : vector<16x1xf32>
    %157 = vector.broadcast %156 : vector<16x1xf32> to vector<16x64xf32>
    %158 = arith.mulf %153, %157 : vector<16x64xf32>
    %159 = vector.broadcast %138 : vector<1x64xf32> to vector<16x64xf32>
    %160 = arith.mulf %158, %159 : vector<16x64xf32>
    %161 = vector.broadcast %140 : vector<1x64xf32> to vector<16x64xf32>
    %162 = arith.addf %160, %161 : vector<16x64xf32>
    %c0_72 = arith.constant 0 : index
    %c0_73 = arith.constant 0 : index
    %163 = vector.load %arg20[%c0_72, %c0_73] : memref<16x64xf32, #tpu.memory_space<vmem>>, vector<16x64xf32>
    tpu.vector_store %arg20[%c0_72, %c0_73], %162 {strides = array<i32>} : memref<16x64xf32, #tpu.memory_space<vmem>>, vector<16x64xf32>,
    %c1_i32 = arith.constant 1 : i32
    %164 = arith.cmpi eq, %arg0, %c1_i32 : i32
    %165 = arith.extui %164 : i1 to i32
    %c0_i32_74 = arith.constant 0 : i32
    %166 = arith.cmpi ne, %165, %c0_i32_74 : i32
    scf.if %166 {
      %167 = vector.shape_cast %162 : vector<16x64xf32> to vector<2x8x64xf32>
      %168 = vector.extract_strided_slice %167 {offsets = [0, 7, 0], sizes = [2, 1, 64], strides = [1, 1, 1]} : vector<2x8x64xf32> to vector<2x1x64xf32>
      %169 = vector.shape_cast %168 : vector<2x1x64xf32> to vector<2x64xf32>
      %170 = arith.truncf %169 : vector<2x64xf32> to vector<2x64xbf16>
      %c0_75 = arith.constant 0 : index
      %c0_76 = arith.constant 0 : index
      %171 = vector.load %arg17[%c0_75, %c0_76] : memref<64x4xbf16, #tpu.memory_space<vmem>>, vector<64x4xbf16>
      %cst_77 = arith.constant dense<0.000000e+00> : vector<2x4xf32>
      %172 = tpu.matmul %170, %171, %cst_77 {dimension_numbers = #tpu.dot_dimension_numbers<[1], [0], [0], [1], [0, 0, 1, 1], [], []>} : vector<2x64xbf16>, vector<64x4xbf16>, vector<2x4xf32> -> vector<2x4xf32>
      %c0_78 = arith.constant 0 : index
      %c0_79 = arith.constant 0 : index
      %173 = vector.load %arg18[%c0_78, %c0_79] : memref<1x4xf32, #tpu.memory_space<vmem>>, vector<1x4xf32>
      %174 = vector.broadcast %173 : vector<1x4xf32> to vector<2x4xf32>
      %175 = arith.addf %172, %174 : vector<2x4xf32>
      %c0_80 = arith.constant 0 : index
      %c0_81 = arith.constant 0 : index
      %176 = vector.load %arg19[%c0_80, %c0_81] : memref<2x4xf32, #tpu.memory_space<vmem>>, vector<2x4xf32>
      tpu.vector_store %arg19[%c0_80, %c0_81], %175 {strides = array<i32>} : memref<2x4xf32, #tpu.memory_space<vmem>>, vector<2x4xf32>,
    } else {
    }
    return
  }
  func.func @transform_0(%arg0: i32) -> (i32, i32) {
    %c0_i32 = arith.constant 0 : i32
    %c0_i32_0 = arith.constant 0 : i32
    %c0_i32_1 = arith.constant 0 : i32
    return %c0_i32, %c0_i32_0 : i32, i32
  }
  func.func @transform_1(%arg0: i32) -> (i32, i32) {
    %c0_i32 = arith.constant 0 : i32
    %c0_i32_0 = arith.constant 0 : i32
    %c0_i32_1 = arith.constant 0 : i32
    return %c0_i32, %c0_i32_0 : i32, i32
  }
  func.func @transform_2(%arg0: i32) -> (i32, i32) {
    %c0_i32 = arith.constant 0 : i32
    %c0_i32_0 = arith.constant 0 : i32
    %c0_i32_1 = arith.constant 0 : i32
    return %c0_i32, %c0_i32_0 : i32, i32
  }
  func.func @transform_3(%arg0: i32) -> (i32, i32) {
    %c0_i32 = arith.constant 0 : i32
    %c0_i32_0 = arith.constant 0 : i32
    %c0_i32_1 = arith.constant 0 : i32
    return %c0_i32, %c0_i32_0 : i32, i32
  }
  func.func @transform_4(%arg0: i32) -> (i32, i32, i32) {
    %c0_i32 = arith.constant 0 : i32
    %c0_i32_0 = arith.constant 0 : i32
    %c0_i32_1 = arith.constant 0 : i32
    return %arg0, %c0_i32, %c0_i32_0 : i32, i32, i32
  }
  func.func @transform_5(%arg0: i32) -> (i32, i32, i32) {
    %c0_i32 = arith.constant 0 : i32
    %c0_i32_0 = arith.constant 0 : i32
    %c0_i32_1 = arith.constant 0 : i32
    return %arg0, %c0_i32, %c0_i32_0 : i32, i32, i32
  }
  func.func @transform_6(%arg0: i32) -> (i32, i32, i32) {
    %c0_i32 = arith.constant 0 : i32
    %c0_i32_0 = arith.constant 0 : i32
    %c0_i32_1 = arith.constant 0 : i32
    return %arg0, %c0_i32, %c0_i32_0 : i32, i32, i32
  }
  func.func @transform_7(%arg0: i32) -> (i32, i32, i32) {
    %c0_i32 = arith.constant 0 : i32
    %c0_i32_0 = arith.constant 0 : i32
    %c0_i32_1 = arith.constant 0 : i32
    return %arg0, %c0_i32, %c0_i32_0 : i32, i32, i32
  }
  func.func @transform_8(%arg0: i32) -> (i32, i32, i32) {
    %c0_i32 = arith.constant 0 : i32
    %c0_i32_0 = arith.constant 0 : i32
    %c0_i32_1 = arith.constant 0 : i32
    return %arg0, %c0_i32, %c0_i32_0 : i32, i32, i32
  }
  func.func @transform_9(%arg0: i32) -> (i32, i32, i32) {
    %c0_i32 = arith.constant 0 : i32
    %c0_i32_0 = arith.constant 0 : i32
    %c0_i32_1 = arith.constant 0 : i32
    return %arg0, %c0_i32, %c0_i32_0 : i32, i32, i32
  }
  func.func @transform_10(%arg0: i32) -> (i32, i32, i32) {
    %c0_i32 = arith.constant 0 : i32
    %c0_i32_0 = arith.constant 0 : i32
    %c0_i32_1 = arith.constant 0 : i32
    return %arg0, %c0_i32, %c0_i32_0 : i32, i32, i32
  }
  func.func @transform_11(%arg0: i32) -> (i32, i32, i32) {
    %c0_i32 = arith.constant 0 : i32
    %c0_i32_0 = arith.constant 0 : i32
    %c0_i32_1 = arith.constant 0 : i32
    return %arg0, %c0_i32, %c0_i32_0 : i32, i32, i32
  }
  func.func @transform_12(%arg0: i32) -> (i32, i32, i32) {
    %c0_i32 = arith.constant 0 : i32
    %c0_i32_0 = arith.constant 0 : i32
    %c0_i32_1 = arith.constant 0 : i32
    return %arg0, %c0_i32, %c0_i32_0 : i32, i32, i32
  }
  func.func @transform_13(%arg0: i32) -> (i32, i32, i32) {
    %c0_i32 = arith.constant 0 : i32
    %c0_i32_0 = arith.constant 0 : i32
    %c0_i32_1 = arith.constant 0 : i32
    return %arg0, %c0_i32, %c0_i32_0 : i32, i32, i32
  }
  func.func @transform_14(%arg0: i32) -> (i32, i32, i32) {
    %c0_i32 = arith.constant 0 : i32
    %c0_i32_0 = arith.constant 0 : i32
    %c0_i32_1 = arith.constant 0 : i32
    return %arg0, %c0_i32, %c0_i32_0 : i32, i32, i32
  }
  func.func @transform_15(%arg0: i32) -> (i32, i32, i32) {
    %c0_i32 = arith.constant 0 : i32
    %c0_i32_0 = arith.constant 0 : i32
    %c0_i32_1 = arith.constant 0 : i32
    return %arg0, %c0_i32, %c0_i32_0 : i32, i32, i32
  }
  func.func @transform_16(%arg0: i32) -> (i32, i32) {
    %c0_i32 = arith.constant 0 : i32
    %c0_i32_0 = arith.constant 0 : i32
    %c0_i32_1 = arith.constant 0 : i32
    return %c0_i32, %c0_i32_0 : i32, i32
  }
  func.func @transform_17(%arg0: i32) -> (i32, i32) {
    %c0_i32 = arith.constant 0 : i32
    %c0_i32_0 = arith.constant 0 : i32
    %c0_i32_1 = arith.constant 0 : i32
    return %c0_i32, %c0_i32_0 : i32, i32
  }
  func.func @transform_18(%arg0: i32) -> (i32, i32) {
    %c0_i32 = arith.constant 0 : i32
    %c0_i32_0 = arith.constant 0 : i32
    %c0_i32_1 = arith.constant 0 : i32
    return %c0_i32, %c0_i32_0 : i32, i32
  }
}

</mosaic_0001>

<bundles_post_ra>
// kernel: time_series_multi_transformer.1
= control target key start
LH: loop header
LB: loop body
LE: loop exit
PB: predicated region body
PF: predicated region fallthrough
CT: control target
= control target key end

     0   :  { %s6606_s0 = inlined_call_operand.vmem [shape: f32[16,8], index: 0, kind: input, shape index: {}]   ;;  %s6607_s1 = inlined_call_operand.vmem [shape: f32[16,64], index: 1, kind: input, shape index: {}]   ;;  %s6608_s2 = inlined_call_operand.vmem [shape: bf16[8,64], index: 2, kind: input, shape index: {}]   ;;  %s6609_s3 = inlined_call_operand.vmem [shape: f32[1,64], index: 3, kind: input, shape index: {}]   ;;  %s6610_s4 = inlined_call_operand.vmem [shape: bf16[2,64,192], index: 4, kind: input, shape index: {}]   ;;  %s6611_s5 = inlined_call_operand.vmem [shape: f32[2,1,192], index: 5, kind: input, shape index: {}]   ;;  %s6612_s6 = inlined_call_operand.vmem [shape: bf16[2,64,64], index: 6, kind: input, shape index: {}]   ;;  %s6613_s7 = inlined_call_operand.vmem [shape: f32[2,1,64], index: 7, kind: input, shape index: {}]   ;;  %s6614_s8 = inlined_call_operand.vmem [shape: f32[2,1,64], index: 8, kind: input, shape index: {}]   ;;  %s6615_s9 = inlined_call_operand.vmem [shape: f32[2,1,64], index: 9, kind: input, shape index: {}]   ;;  %s6616_s10 = inlined_call_operand.vmem [shape: bf16[2,64,2048], index: 10, kind: input, shape index: {}]   ;;  %s6617_s11 = inlined_call_operand.vmem [shape: f32[2,1,2048], index: 11, kind: input, shape index: {}]   ;;  %s6618_s12 = inlined_call_operand.vmem [shape: bf16[2,2048,64], index: 12, kind: input, shape index: {}]   ;;  %s6619_s13 = inlined_call_operand.vmem [shape: f32[2,1,64], index: 13, kind: input, shape index: {}]   ;;  %s6620_s14 = inlined_call_operand.vmem [shape: f32[2,1,64], index: 14, kind: input, shape index: {}]   ;;  %s6621_s15 = inlined_call_operand.vmem [shape: f32[2,1,64], index: 15, kind: input, shape index: {}]   ;;  %s6622_s16 = inlined_call_operand.vmem [shape: bf16[64,4], index: 16, kind: input, shape index: {}]   ;;  %s6623_s17 = inlined_call_operand.vmem [shape: f32[1,4], index: 17, kind: input, shape index: {}]   ;;  %s6624_s18 = inlined_call_operand.hbm [shape: f32[2,4], index: 18, kind: output, shape index: {}]  }
   0x1   :  { %6629 = sst [smem:[#allocation8_spill]] %s6606_s0 }
   0x2   :  { %6630 = sst [smem:[#allocation9_spill]] %s6607_s1 }
   0x3   :  { %6631 = sst [smem:[#allocation10_spill]] %s6608_s2 }
   0x4   :  { %6632 = sst [smem:[#allocation11_spill]] %s6610_s4 }
   0x5   :  { %6633 = sst [smem:[#allocation12_spill]] %s6611_s5 }
   0x6   :  { %6634 = sst [smem:[#allocation13_spill]] %s6612_s6 }
   0x7   :  { %6635 = sst [smem:[#allocation14_spill]] %s6622_s16 }
   0x8   :  { %6636 = sst [smem:[#allocation15_spill]] %s6623_s17 }
   0x9   :  { %6637 = sst [smem:[#allocation16_spill]] %s6624_s18 }
   0xa   :  { %23 = vsyncpa [#allocation4], 0  ;;  %s5925_s27 = smov 0  }
   0xb LB: > { %6638 = sst [smem:[#allocation6_spill]] %s5813_s27  ;;  %s5931_s28 = sadd.s32 4294967295, %s5813_s27   ;;  %s5813_s27 = sphi %s5925_s27, %s29_s27  }
   0xc   : > { %p4942_p0 = scmp.ge.s32.totalorder %s5813_s27, 1  ;;  %p604_p1 = scmp.lt.s32.totalorder %s5813_s27, 3 }
   0xe   : > { %p605_p2 = pnand %p4942_p0, %p604_p1 }
  0x10   : > { %608 = sbr.rel (%p605_p2) target bundleno = 4587 (0x11eb), region = 92 }
  0x15   : > { %p694_p3 = scmp.lt.s32.totalorder %s5931_s28, 1  ;;  %s6639_s4 = sld [smem:[#allocation11_spill]] }
  0x16   : > { %s6640_s5 = sld [smem:[#allocation12_spill]]  ;;  %p4953_p4 = scmp.ne.s32.totalorder %s5931_s28, 0 }
  0x17   : > { %s5937_s29 = scalar_select %p694_p3, %s5931_s28, 1 }
  0x18   : > { %s6642_s6 = sld [smem:[#allocation13_spill]] }
  0x19   : > { %s5211_s30 = sshll.u32 %s5937_s29, 6  ;;  %s4945_s0 = sshll.u32 %s5937_s29, 1 }
  0x1a   : > { %s5212_s23 = sshll.u32 %s5937_s29, 5  ;;  %s4950_s24 = sshll.u32 %s5937_s29, 4 }
  0x1b   : > { %s5944_s20 = scalar_lea.vmem %s6639_s4, %s5211_s30  ;;  %s5979_s18 = scalar_lea.vmem %s6617_s11, %s4950_s24 }
  0x1c   : > { %s5949_s2 = scalar_lea.vmem %s6640_s5, %s4945_s0  ;;  %s5213_s0 = sshll.u32 %s5937_s29, 9 }
  0x1d   : > { %6641 = sst [smem:[#allocation7_spill]] %s5949_s2  ;;  %s5973_s2 = scalar_lea.vmem %s6616_s10, %s5213_s0 }
  0x1e   : > { %s5959_s17 = scalar_lea.vmem %s6642_s6, %s5212_s23  ;;  %s5214_s27 = sshll.u32 %s5937_s29, 10 }
  0x1f   : > { %s5985_s19 = scalar_lea.vmem %s6618_s12, %s5214_s27  ;;  %s733_s21 = scalar_lea.vmem %s6619_s13, %s5937_s29 }
  0x20   : > { %s736_s0 = scalar_lea.vmem %s6620_s14, %s5937_s29  ;;  %s739_s26 = scalar_lea.vmem %s6621_s15, %s5937_s29 }
  0x21   : > { %744 = sbr.rel (%p4953_p4) target bundleno = 246 (0xf6), region = 96  ;;  %s6643_s23 = sld [smem:[#allocation10_spill]] (!%p4953_p4) }
  0x22   : > { %s6644_s4 = sld [smem:[#allocation8_spill]] (!%p4953_p4) }
  0x23   : > { %s6645_s25 = sld [smem:[#allocation9_spill]] (!%p4953_p4) }
  0x26   : > { %vm760_vm0 = vcmask 1043456   ;;  %v5815_v2 = vmov 0.0   ;;  %vm5816_vm1 = vmmov 0   ;;  %vm756_vm2 = vcmask 64512   ;;  %v4954_v6 = vld [vmem:[%s6609_s3] ss:$0 sm:$0xff] }
  0x27   : > { %v748_v0 = vld [vmem:[%s6643_s23] sm:$0xf]  ;;  %5435 = vmatprep.subr.bf16.mxu0 %v5815_v2  ;;  %5437 = vmatprep.mubr.msk.bf16.mxu0 %vm5816_vm1, %v5815_v2  ;;  %vm809_vm3 = vcmask 523264  }
  0x28   : > { %v745_v1 = vld [vmem:[%s6644_s4] sm:$0xff]  ;;  %v762_v3 = vsel %vm760_vm0, %v748_v0, 0  ;;  %v746_v4 = vld [vmem:[%s6644_s4 + $0x8] sm:$0xff] }
  0x29   : > { %5436 = vmatpush3.bf16.msra.mxu0 %v762_v3  ;;  %v747_v5 = vpack.c.bf16 %v746_v4, %v745_v1  ;;  %v805_v8 = vld [vmem:[%s6645_s25] sm:$0xff]  ;;  %v806_v13 = vld [vmem:[%s6645_s25 + $0x8] sm:$0xff] }
  0x2c   : > { %5438 = vmatmul.mubr.msk.bf16.vlgmr.msra.gmra.mxu0 %vm756_vm2, %v747_v5 }
  0xec   : > { %v798_v7 = vpop.f32.mrf.mxu0 }
  0xed   : > { %v799_v9 = vadd.f32 %v4954_v6, %v798_v7 }
  0xee   : > { %v5439_v10 = vpop.f32.mrf.mxu0 }
  0xef   : > { %v807_v11 = vadd.f32 %v805_v8, %v799_v9 }
  0xf0   : > { %v801_v12 = vpop.f32.mrf.mxu0 }
  0xf1   : > { %810 = vst.msk [vmem:[#allocation2] sm:$0xff] %vm809_vm3, %v807_v11  ;;  %v802_v14 = vadd.f32 %v4954_v6, %v801_v12 }
  0xf2   : > { %v5440_v15 = vpop.f32.mrf.mxu0 }
  0xf3   : > { %v808_v16 = vadd.f32 %v806_v13, %v802_v14 }
  0xf5   : > { %811 = vst.msk [vmem:[#allocation2 + $0x8] sm:$0xff] %vm809_vm3, %v808_v16 }
  0xf6 PF: > { %v5589_v17 = vld [vmem:[%s5944_s20 + $0x34] ss:$8 sps:$4 sm:$0xff]   ;;  %v5591_v18 = vld [vmem:[%s5944_s20 + $0x30] ss:$8 sps:$4 sm:$0xff]   ;;  %v5817_v19 = vmov 0   ;;  %vm875_vm4 = vcmask 523264   ;;  %v825_v30 = vlaneseq  ;;  %s6647_s27 = scalar_lea.vmem %s6613_s7, %s5937_s29 }
  0xf7   : > { %911 = vmatprep.mubr.bf16.mxu0 %v5817_v19  ;;  %887 = vmatprep.subr.bf16.mxu0 %v5589_v17  ;;  %v5592_v20 = vld [vmem:[%s5944_s20 + $0x24] ss:$8 sps:$4 sm:$0xff]   ;;  %v5594_v21 = vld [vmem:[%s5944_s20 + $0x20] ss:$8 sps:$4 sm:$0xff]   ;;  %v5595_v22 = vld [vmem:[%s5944_s20 + $0x14] ss:$8 sps:$4 sm:$0xff]  }
  0xf8   : > { %888 = vmatpush1.bf16.msra.mxu0 %v5591_v18  ;;  %v5597_v23 = vld [vmem:[%s5944_s20 + $0x10] ss:$8 sps:$4 sm:$0xff]   ;;  %v5598_v24 = vld [vmem:[%s5944_s20 + $0x4] ss:$8 sps:$4 sm:$0xff]   ;;  %v5600_v25 = vld [vmem:[%s5944_s20] ss:$8 sps:$4 sm:$0xff]  }
  0xf9   : > { %889 = vmatprep.subr.bf16.mxu0 %v5592_v20  ;;  %v812_v26 = vld [vmem:[#allocation2] sm:$0xff]  ;;  %s6646_s16 = sld [smem:[#allocation7_spill]]  ;;  %v5818_v29 = vmov 0.0   ;;  %v6030_v31 = vshrl.u32 %v825_v30, 7  ;;  %vm5819_vm5 = vmmov 0   ;;  %s5820_s20 = smov 64  }
  0xfa   : > { %5446 = vmatprep.subr.mxu1 %v5818_v29  ;;  %5448 = vmatprep.mubr.msk.f32.mxu1 %vm5819_vm5, %v5818_v29  ;;  %vm925_vm6 = vcmask 130048   ;;  %vm1079_vm7 = vcmask 64512   ;;  %s5821_s30 = smov 48   ;;  %s5822_s6 = smov 112   ;;  %vm2272_vm8 = vcmask 261120   ;;  %vm2275_vm9 = vcmask 392192  }
  0xfb   : > { %v6037_v32 = vsub.s32 0, %v6030_v31  ;;  %v6048_v40 = vsub.s32 1, %v6030_v31  ;;  %s5823_s1 = smov 32   ;;  %s5824_s5 = smov 96  }
  0xfc   : > { %890 = vmatpush1.bf16.msra.mxu0 %v5594_v21  ;;  %v813_v27 = vld [vmem:[#allocation2 + $0x8] sm:$0xff]  ;;  %s5825_s22 = smov 16   ;;  %s5826_s24 = smov 80  }
  0xfd   : > { %891 = vmatprep.subr.bf16.mxu0 %v5595_v22  ;;  %v814_v28 = vpack.c.bf16 %v813_v27, %v812_v26  ;;  %p5200_p5 = scmp.ne.s32.totalorder %s5931_s28, 1 }
  0xfe   : > { %s6650_s23 = sld [smem:[#allocation14_spill]] (!%p5200_p5) }
  0xff   : > { %v823_v33 = vld [vmem:[%s6646_s16] sm:$0x3] }
 0x100   : > { %892 = vmatpush1.bf16.msra.mxu0 %v5597_v23  ;;  %v828_v34 = vrot.slane %v823_v33, %v6037_v32  ;;  %v832_v42 = vrot.slane %v823_v33, %v6048_v40 }
 0x101   : > { %893 = vmatprep.subr.bf16.mxu0 %v5598_v24 }
 0x104   : > { %894 = vmatpush1.bf16.msra.mxu0 %v5600_v25 }
 0x105   : > { %5441 = vmatprep.subr.mxu0 %v5818_v29 }
 0x107   : > { %4964 = vmatmul.mubr.msk.bf16.vlgmr.msra.gmra.mxu0 %vm875_vm4, %v814_v28 }
 0x108   : > { %5443 = vmatprep.mubr.msk.f32.mxu0 %vm5819_vm5, %v5818_v29 }
 0x1c7   : > { %v913_v35 = vpop.f32.mrf.mxu0 }
 0x1c8   : > { %v6041_v36 = vadd.f32 %v913_v35, %v828_v34 }
 0x1c9   : > { %v915_v37 = vpop.f32.mrf.mxu0 }
 0x1ca   : > { %923 = vrot.lane.b32.xlu0 %v6041_v36, %s5820_s20  ;;  %v6059_v44 = vadd.f32 %v915_v37, %v832_v42 }
 0x1cb   : > { %v917_v38 = vpop.f32.mrf.mxu0 }
 0x1cc   : > { %v6044_v39 = vadd.f32 %v917_v38, %v828_v34 }
 0x1cd   : > { %v919_v45 = vpop.f32.mrf.mxu0 }
 0x1ce   : > { %1001 = vrot.lane.b32.xlu0 %v6044_v39, %s5820_s20  ;;  %v6084_v8 = vadd.f32 %v919_v45, %v832_v42 }
 0x23c   : > { %v924_v41 = vpop.permute.xlu0 %923 }
 0x23d   : > { %5442 = vmatpush3.xpose.msk.msra.mxu0 %vm925_vm6, %v924_v41 }
 0x23e   : > { %5466 = vmatprep.subr.mxu0 %v5818_v29 }
 0x240   : > { %5444 = vmatmul.mubr.msk.f32.vlgmr.msra.gmra.mxu0 %vm925_vm6, %v6041_v36  ;;  %v1002_v43 = vpop.permute.xlu0 %1001 }
 0x241   : > { %5447 = vmatpush3.xpose.msk.msra.mxu1 %vm925_vm6, %v1002_v43  ;;  %5468 = vmatprep.mubr.msk.f32.mxu0 %vm5819_vm5, %v5818_v29 }
 0x242   : > { %5451 = vmatprep.subr.mxu1 %v5818_v29 }
 0x244   : > { %5449 = vmatmul.mubr.msk.f32.vlgmr.msra.gmra.mxu1 %vm925_vm6, %v6044_v39 }
 0x245   : > { %5452 = vmatpush3.msra.mxu1 %v6059_v44  ;;  %5453 = vmatprep.mubr.msk.f32.mxu1 %vm5819_vm5, %v5818_v29 }
 0x246   : > { %5456 = vmatprep.subr.mxu1 %v5818_v29 }
 0x300   : > { %v996_v46 = vpop.f32.mrf.mxu0 }
 0x301   : > { %v1077_v47 = vmul.f32 0.25, %v996_v46 }
 0x302   : > { %v5445_v48 = vpop.f32.mrf.mxu0 }
 0x303   : > { %v1080_v49 = vsel %vm1079_vm7, %v1077_v47, -inf }
 0x304   : > { %1081 = vmax.xlane.f32.xlu1 %v1080_v49  ;;  %v1073_v50 = vpop.f32.mrf.mxu1 }
 0x305   : > { %v1078_v51 = vmul.f32 0.25, %v1073_v50 }
 0x306   : > { %v5450_v52 = vpop.f32.mrf.mxu1 }
 0x307   : > { %v1083_v53 = vsel %vm1079_vm7, %v1078_v51, -inf }
 0x308   : > { %1084 = vmax.xlane.f32.xlu1 %v1083_v53 }
 0x319   : > { %1250 = vrot.lane.b32.xlu1 %v6041_v36, %s5821_s30 }
 0x31d   : > { %1328 = vrot.lane.b32.xlu1 %v6044_v39, %s5821_s30 }
 0x321   : > { %1248 = vrot.lane.b32.xlu1 %v6041_v36, %s5822_s6 }
 0x38d   : > { %v1082_v54 = vpop.xlane.xlu1 %1081 }
 0x38e   : > { %v1086_v55 = vsub.f32 %v1077_v47, %v1082_v54 }
 0x390   : > { %v1088_v56 = vmul.f32 1.442695, %v1086_v55 }
 0x391   : > { %v1085_v57 = vpop.xlane.xlu1 %1084 }
 0x392   : > { %5733 = vpow2.f32 %v1088_v56  ;;  %v1087_v58 = vsub.f32 %v1078_v51, %v1085_v57 }
 0x394   : > { %v1090_v59 = vmul.f32 1.442695, %v1087_v58 }
 0x395   : > { %v1251_v60 = vpop.permute.xlu1 %1250 }
 0x396   : > { %5735 = vpow2.f32 %v1090_v59 }
 0x399   : > { %v1329_v61 = vpop.permute.xlu1 %1328 }
 0x39a   : > { %5467 = vmatpush3.xpose.msk.msra.mxu0 %vm925_vm6, %v1329_v61 }
 0x39b   : > { %5476 = vmatprep.subr.mxu0 %v5818_v29 }
 0x39d   : > { %v1249_v2 = vpop.permute.xlu1 %1248 }
 0x39f   : > { %v5734_v62 = vpop.eup %5733 }
 0x3a0   : > { %v1092_v63 = vsel %vm1079_vm7, %v5734_v62, 0.0 }
 0x3a1   : > { %1093 = vadd.xlane.f32.xlu0 %v1092_v63 }
 0x3a3   : > { %v5736_v0 = vpop.eup %5735 }
 0x3a4   : > { %v1095_v1 = vsel %vm1079_vm7, %v5736_v0, 0.0 }
 0x3a5   : > { %1096 = vadd.xlane.f32.xlu1 %v1095_v1 }
 0x3b6   : > { %1326 = vrot.lane.b32.xlu1 %v6044_v39, %s5822_s6 }
 0x42a   : > { %v1094_v3 = vpop.xlane.xlu0 %1093 }
 0x42b   : > { %5737 = vrcp.f32 %v1094_v3 }
 0x42e   : > { %v1097_v4 = vpop.xlane.xlu1 %1096 }
 0x42f   : > { %5739 = vrcp.f32 %v1097_v4 }
 0x432   : > { %v1327_v5 = vpop.permute.xlu1 %1326 }
 0x433   : > { %5469 = vmatmul.mubr.msk.f32.vlgmr.msra.gmra.mxu0 %vm925_vm6, %v1327_v5 }
 0x434   : > { %5478 = vmatprep.mubr.msk.f32.mxu0 %vm5819_vm5, %v5818_v29 }
 0x438   : > { %v5738_v6 = vpop.eup %5737 }
 0x439   : > { %v1100_v7 = vmul.f32 %v5738_v6, %v5734_v62 }
 0x43b   : > { %5454 = vmatmul.mubr.msk.f32.vlgmr.msra.gmra.mxu1 %vm1079_vm7, %v1100_v7 }
 0x43c   : > { %v5740_v9 = vpop.eup %5739  ;;  %5457 = vmatpush3.msra.mxu1 %v6084_v8  ;;  %5458 = vmatprep.mubr.msk.f32.mxu1 %vm5819_vm5, %v5818_v29 }
 0x43d   : > { %5461 = vmatprep.subr.mxu1 %v5818_v29  ;;  %v1101_v10 = vmul.f32 %v5740_v9, %v5736_v0 }
 0x43f   : > { %5459 = vmatmul.mubr.msk.f32.vlgmr.msra.gmra.mxu1 %vm1079_vm7, %v1101_v10 }
 0x440   : > { %5462 = vmatpush3.xpose.msk.msra.mxu1 %vm925_vm6, %v1251_v60  ;;  %5463 = vmatprep.mubr.msk.f32.mxu1 %vm5819_vm5, %v5818_v29 }
 0x441   : > { %5471 = vmatprep.subr.mxu1 %v5818_v29 }
 0x443   : > { %5464 = vmatmul.mubr.msk.f32.vlgmr.msra.gmra.mxu1 %vm925_vm6, %v1249_v2 }
 0x444   : > { %5473 = vmatprep.mubr.msk.f32.mxu1 %vm5819_vm5, %v5818_v29 }
 0x4f3   : > { %v1400_v11 = vpop.f32.mrf.mxu0 }
 0x4f4   : > { %v1405_v12 = vmul.f32 0.25, %v1400_v11 }
 0x4f5   : > { %v5470_v13 = vpop.f32.mrf.mxu0 }
 0x4f6   : > { %v1409_v14 = vsel %vm1079_vm7, %v1405_v12, -inf }
 0x4f7   : > { %1410 = vmax.xlane.f32.xlu1 %v1409_v14 }
 0x4fb   : > { %v6100_v15 = vpop.f32.mrf.mxu1 }
 0x4fd   : > { %v5455_v16 = vpop.f32.mrf.mxu1 }
 0x4ff   : > { %v6102_v17 = vpop.f32.mrf.mxu1 }
 0x501   : > { %v5460_v18 = vpop.f32.mrf.mxu1 }
 0x503   : > { %v1322_v20 = vpop.f32.mrf.mxu1 }
 0x504   : > { %v1404_v21 = vmul.f32 0.25, %v1322_v20 }
 0x505   : > { %v5465_v22 = vpop.f32.mrf.mxu1 }
 0x506   : > { %v1406_v23 = vsel %vm1079_vm7, %v1404_v21, -inf }
 0x507   : > { %1407 = vmax.xlane.f32.xlu0 %v1406_v23 }
 0x508   : > { %1662 = vrot.lane.b32.xlu1 %v6044_v39, %s5823_s1 }
 0x580   : > { %v1411_v24 = vpop.xlane.xlu1 %1410 }
 0x581   : > { %v1413_v25 = vsub.f32 %v1405_v12, %v1411_v24 }
 0x583   : > { %v1416_v26 = vmul.f32 1.442695, %v1413_v25 }
 0x584   : > { %v1663_v46 = vpop.permute.xlu1 %1662 }
 0x585   : > { %5741 = vpow2.f32 %v1416_v26 }
 0x590   : > { %v1408_v30 = vpop.xlane.xlu0 %1407 }
 0x591   : > { %v1412_v33 = vsub.f32 %v1404_v21, %v1408_v30 }
 0x592   : > { %v5742_v27 = vpop.eup %5741 }
 0x593   : > { %v1421_v28 = vsel %vm1079_vm7, %v5742_v27, 0.0  ;;  %v1414_v34 = vmul.f32 1.442695, %v1412_v33 }
 0x594   : > { %1422 = vadd.xlane.f32.xlu0 %v1421_v28 }
 0x595   : > { %5743 = vpow2.f32 %v1414_v34 }
 0x5a2   : > { %v5744_v35 = vpop.eup %5743 }
 0x5a3   : > { %v1418_v37 = vsel %vm1079_vm7, %v5744_v35, 0.0 }
 0x5aa   : > { %1429 = vrot.lane.b32.xlu0 %v6059_v44, %s5822_s6 }
 0x5ae   : > { %1506 = vrot.lane.b32.xlu0 %v6084_v8, %s5822_s6 }
 0x5b2   : > { %1584 = vrot.lane.b32.xlu0 %v6041_v36, %s5823_s1 }
 0x5d1   : > { %1419 = vadd.xlane.f32.xlu0 %v1418_v37 }
 0x5e7   : > { %1582 = vrot.lane.b32.xlu0 %v6041_v36, %s5824_s5 }
 0x5eb   : > { %1660 = vrot.lane.b32.xlu0 %v6044_v39, %s5824_s5 }
 0x61d   : > { %v1423_v38 = vpop.xlane.xlu0 %1422 }
 0x61e   : > { %5745 = vrcp.f32 %v1423_v38 }
 0x621   : > { %v1430_v41 = vpop.permute.xlu0 %1429 }
 0x622   : > { %5472 = vmatpush3.msra.mxu1 %v1430_v41 }
 0x623   : > { %5481 = vmatprep.subr.mxu1 %v5818_v29 }
 0x625   : > { %v1507_v42 = vpop.permute.xlu0 %1506 }
 0x626   : > { %5477 = vmatpush3.msra.mxu0 %v1507_v42 }
 0x627   : > { %5486 = vmatprep.subr.mxu0 %v5818_v29 }
 0x629   : > { %v1585_v47 = vpop.permute.xlu0 %1584 }
 0x62b   : > { %v5746_v43 = vpop.eup %5745 }
 0x62c   : > { %v1427_v45 = vmul.f32 %v5746_v43, %v5742_v27 }
 0x62e   : > { %5479 = vmatmul.mubr.msk.f32.vlgmr.msra.gmra.mxu0 %vm1079_vm7, %v1427_v45 }
 0x62f   : > { %5487 = vmatpush3.xpose.msk.msra.mxu0 %vm925_vm6, %v1663_v46  ;;  %5488 = vmatprep.mubr.msk.f32.mxu0 %vm5819_vm5, %v5818_v29 }
 0x630   : > { %5496 = vmatprep.subr.mxu0 %v5818_v29 }
 0x65a   : > { %v1420_v48 = vpop.xlane.xlu0 %1419 }
 0x65b   : > { %5747 = vrcp.f32 %v1420_v48 }
 0x65e   : > { %v1583_v49 = vpop.permute.xlu0 %1582 }
 0x662   : > { %v1661_v50 = vpop.permute.xlu0 %1660 }
 0x663   : > { %5489 = vmatmul.mubr.msk.f32.vlgmr.msra.gmra.mxu0 %vm925_vm6, %v1661_v50 }
 0x664   : > { %5498 = vmatprep.mubr.msk.f32.mxu0 %vm5819_vm5, %v5818_v29 }
 0x668   : > { %v5748_v51 = vpop.eup %5747 }
 0x669   : > { %v1426_v52 = vmul.f32 %v5748_v51, %v5744_v35 }
 0x66b   : > { %5474 = vmatmul.mubr.msk.f32.vlgmr.msra.gmra.mxu1 %vm1079_vm7, %v1426_v52 }
 0x66c   : > { %5482 = vmatpush3.xpose.msk.msra.mxu1 %vm925_vm6, %v1585_v47  ;;  %5483 = vmatprep.mubr.msk.f32.mxu1 %vm5819_vm5, %v5818_v29 }
 0x66d   : > { %5491 = vmatprep.subr.mxu1 %v5818_v29 }
 0x66f   : > { %5484 = vmatmul.mubr.msk.f32.vlgmr.msra.gmra.mxu1 %vm925_vm6, %v1583_v49 }
 0x670   : > { %5493 = vmatprep.mubr.msk.f32.mxu1 %vm5819_vm5, %v5818_v29 }
 0x6ee   : > { %v6137_v53 = vpop.f32.mrf.mxu0 }
 0x6f0   : > { %v5480_v54 = vpop.f32.mrf.mxu0 }
 0x723   : > { %v1734_v55 = vpop.f32.mrf.mxu0 }
 0x724   : > { %v1739_v56 = vmul.f32 0.25, %v1734_v55 }
 0x725   : > { %v5490_v57 = vpop.f32.mrf.mxu0 }
 0x726   : > { %v1743_v58 = vsel %vm1079_vm7, %v1739_v56, -inf }
 0x727   : > { %1744 = vmax.xlane.f32.xlu1 %v1743_v58 }
 0x72b   : > { %v6140_v59 = vpop.f32.mrf.mxu1 }
 0x72c   : > { %v5574_v60 = vpack.i.bf16 %v6137_v53, %v6140_v59  ;;  %v5601_v59 = vld [vmem:[%s5959_s17 + $0x18] sm:$0xff]  }
 0x72d   : > { %v5475_v61 = vpop.f32.mrf.mxu1 }
 0x72f   : > { %v1656_v62 = vpop.f32.mrf.mxu1 }
 0x730   : > { %v1738_v63 = vmul.f32 0.25, %v1656_v62 }
 0x731   : > { %v5485_v0 = vpop.f32.mrf.mxu1 }
 0x732   : > { %v1740_v1 = vsel %vm1079_vm7, %v1738_v63, -inf  ;;  %v5603_v0 = vld [vmem:[%s5959_s17 + $0x8] sm:$0xff]  }
 0x733   : > { %1741 = vmax.xlane.f32.xlu0 %v1740_v1 }
 0x738   : > { %1838 = vrot.lane.b32.xlu1 %v6084_v8, %s5824_s5 }
 0x73c   : > { %1916 = vrot.lane.b32.xlu1 %v6041_v36, %s5825_s22 }
 0x740   : > { %1914 = vrot.lane.b32.xlu1 %v6041_v36, %s5826_s24 }
 0x7b0   : > { %v1745_v2 = vpop.xlane.xlu1 %1744 }
 0x7b1   : > { %v1747_v3 = vsub.f32 %v1739_v56, %v1745_v2 }
 0x7b3   : > { %v1750_v4 = vmul.f32 1.442695, %v1747_v3  ;;  %v5604_v3 = vld [vmem:[%s5959_s17] sm:$0xff]  }
 0x7b4   : > { %v1839_v5 = vpop.permute.xlu1 %1838 }
 0x7b5   : > { %5749 = vpow2.f32 %v1750_v4  ;;  %5497 = vmatpush3.msra.mxu0 %v1839_v5 }
 0x7b6   : > { %5506 = vmatprep.subr.mxu0 %v5818_v29 }
 0x7b8   : > { %v1917_v23 = vpop.permute.xlu1 %1916 }
 0x7bc   : > { %v1742_v9 = vpop.xlane.xlu0 %1741  ;;  %v1915_v25 = vpop.permute.xlu1 %1914 }
 0x7bd   : > { %v1746_v10 = vsub.f32 %v1738_v63, %v1742_v9 }
 0x7bf   : > { %v1748_v11 = vmul.f32 1.442695, %v1746_v10 }
 0x7c1   : > { %5751 = vpow2.f32 %v1748_v11 }
 0x7c2   : > { %v5750_v6 = vpop.eup %5749 }
 0x7c3   : > { %v1755_v7 = vsel %vm1079_vm7, %v5750_v6, 0.0 }
 0x7c4   : > { %1756 = vadd.xlane.f32.xlu0 %v1755_v7 }
 0x7ce   : > { %v5752_v36 = vpop.eup %5751 }
 0x7cf   : > { %v1752_v12 = vsel %vm1079_vm7, %v5752_v36, 0.0 }
 0x7da   : > { %1762 = vrot.lane.b32.xlu0 %v6059_v44, %s5824_s5  ;;  %s6649_s5 = scalar_lea.vmem %s6615_s9, %s5937_s29 }
 0x7f9   : > { %1753 = vadd.xlane.f32.xlu0 %v1752_v12 }
 0x80f   : > { %1994 = vrot.lane.b32.xlu0 %v6044_v39, %s5825_s22 }
 0x813   : > { %1992 = vrot.lane.b32.xlu0 %v6044_v39, %s5826_s24 }
 0x84d   : > { %v1757_v13 = vpop.xlane.xlu0 %1756 }
 0x84e   : > { %5753 = vrcp.f32 %v1757_v13 }
 0x851   : > { %v1763_v14 = vpop.permute.xlu0 %1762 }
 0x852   : > { %5492 = vmatpush3.msra.mxu1 %v1763_v14 }
 0x853   : > { %5501 = vmatprep.subr.mxu1 %v5818_v29 }
 0x85b   : > { %v5754_v16 = vpop.eup %5753 }
 0x85c   : > { %v1761_v18 = vmul.f32 %v5754_v16, %v5750_v6 }
 0x85e   : > { %5499 = vmatmul.mubr.msk.f32.vlgmr.msra.gmra.mxu0 %vm1079_vm7, %v1761_v18 }
 0x85f   : > { %5508 = vmatprep.mubr.msk.f32.mxu0 %vm5819_vm5, %v5818_v29 }
 0x882   : > { %v1754_v20 = vpop.xlane.xlu0 %1753 }
 0x883   : > { %5755 = vrcp.f32 %v1754_v20 }
 0x886   : > { %v1995_v21 = vpop.permute.xlu0 %1994 }
 0x887   : > { %5507 = vmatpush3.xpose.msk.msra.mxu0 %vm925_vm6, %v1995_v21 }
 0x888   : > { %5516 = vmatprep.subr.mxu0 %v5818_v29 }
 0x88a   : > { %v1993_v39 = vpop.permute.xlu0 %1992 }
 0x88b   : > { %5509 = vmatmul.mubr.msk.f32.vlgmr.msra.gmra.mxu0 %vm925_vm6, %v1993_v39 }
 0x88c   : > { %5518 = vmatprep.mubr.msk.f32.mxu0 %vm5819_vm5, %v5818_v29 }
 0x890   : > { %v5756_v22 = vpop.eup %5755 }
 0x891   : > { %v1760_v24 = vmul.f32 %v5756_v22, %v5752_v36 }
 0x893   : > { %5494 = vmatmul.mubr.msk.f32.vlgmr.msra.gmra.mxu1 %vm1079_vm7, %v1760_v24  ;;  %v4989_v24 = vld [vmem:[%s6647_s27] ss:$0 sm:$0xff] }
 0x894   : > { %5502 = vmatpush3.xpose.msk.msra.mxu1 %vm925_vm6, %v1917_v23  ;;  %5503 = vmatprep.mubr.msk.f32.mxu1 %vm5819_vm5, %v5818_v29 }
 0x895   : > { %5511 = vmatprep.subr.mxu1 %v5818_v29 }
 0x897   : > { %5504 = vmatmul.mubr.msk.f32.vlgmr.msra.gmra.mxu1 %vm925_vm6, %v1915_v25 }
 0x898   : > { %5513 = vmatprep.mubr.msk.f32.mxu1 %vm5819_vm5, %v5818_v29 }
 0x91e   : > { %v1910_v26 = vpop.f32.mrf.mxu0 }
 0x920   : > { %v5500_v27 = vpop.f32.mrf.mxu0 }
 0x94b   : > { %v2066_v28 = vpop.f32.mrf.mxu0 }
 0x94c   : > { %v2071_v30 = vmul.f32 0.25, %v2066_v28 }
 0x94d   : > { %v5510_v33 = vpop.f32.mrf.mxu0 }
 0x94e   : > { %v2075_v34 = vsel %vm1079_vm7, %v2071_v30, -inf }
 0x94f   : > { %2076 = vmax.xlane.f32.xlu0 %v2075_v34 }
 0x953   : > { %v1834_v35 = vpop.f32.mrf.mxu1 }
 0x954   : > { %v5579_v37 = vpack.i.bf16 %v1910_v26, %v1834_v35  ;;  %v5774_v35 = vld [vmem:[#allocation2 + $0x8] sm:$0xff] }
 0x955   : > { %v5495_v38 = vpop.f32.mrf.mxu1 }
 0x957   : > { %v1988_v41 = vpop.f32.mrf.mxu1 }
 0x958   : > { %v2070_v42 = vmul.f32 0.25, %v1988_v41 }
 0x959   : > { %v5505_v43 = vpop.f32.mrf.mxu1 }
 0x95a   : > { %v2072_v45 = vsel %vm1079_vm7, %v2070_v42, -inf }
 0x95b   : > { %2073 = vmax.xlane.f32.xlu1 %v2072_v45 }
 0x9d8   : > { %v2077_v46 = vpop.xlane.xlu0 %2076 }
 0x9d9   : > { %v2079_v47 = vsub.f32 %v2071_v30, %v2077_v46 }
 0x9db   : > { %v2082_v48 = vmul.f32 1.442695, %v2079_v47 }
 0x9dd   : > { %5757 = vpow2.f32 %v2082_v48 }
 0x9e4   : > { %v2074_v49 = vpop.xlane.xlu1 %2073 }
 0x9e5   : > { %v2078_v50 = vsub.f32 %v2070_v42, %v2074_v49 }
 0x9e7   : > { %v2080_v51 = vmul.f32 1.442695, %v2078_v50 }
 0x9e9   : > { %5759 = vpow2.f32 %v2080_v51 }
 0x9ea   : > { %v5758_v52 = vpop.eup %5757 }
 0x9eb   : > { %v2087_v54 = vsel %vm1079_vm7, %v5758_v52, 0.0 }
 0x9ec   : > { %2088 = vadd.xlane.f32.xlu1 %v2087_v54  ;;  %v2466_v54 = vld [vmem:[%s5973_s2 + $0x1c0] sm:$0xff] }
 0x9f6   : > { %v5760_v55 = vpop.eup %5759 }
 0x9f7   : > { %v2084_v56 = vsel %vm1079_vm7, %v5760_v55, 0.0 }
 0x9f8   : > { %2085 = vadd.xlane.f32.xlu0 %v2084_v56 }
 0x9fd   : > { %2170 = vrot.lane.b32.xlu1 %v6084_v8, %s5826_s24 }
 0xa01   : > { %5575 = vrot.lane.b32.xlu1 %v5574_v60, %s5825_s22  ;;  %v5602_v60 = vld [vmem:[%s5959_s17 + $0x10] sm:$0xff]  }
 0xa0e   : > { %2094 = vrot.lane.b32.xlu0 %v6059_v44, %s5826_s24 }
 0xa12   : > { %5580 = vrot.lane.b32.xlu0 %v5579_v37, %s5823_s1 }
 0xa75   : > { %v2089_v57 = vpop.xlane.xlu1 %2088 }
 0xa76   : > { %5761 = vrcp.f32 %v2089_v57  ;;  %v2467_v57 = vld [vmem:[%s5973_s2 + $0x1c8] sm:$0xff] }
 0xa79   : > { %v2171_v58 = vpop.permute.xlu1 %2170 }
 0xa7a   : > { %5517 = vmatpush3.msra.mxu0 %v2171_v58 }
 0xa7d   : > { %v5576_v7 = vpop.permute.xlu1 %5575 }
 0xa7e   : > { %v5578_v10 = vunpack.i.h.bf16 %v5576_v7  ;;  %v5577_v11 = vunpack.i.l.bf16 %v5576_v7 }
 0xa80   : > { %v2270_v14 = vsel %vm925_vm6, %v6100_v15, %v5577_v11  ;;  %v5773_v15 = vld [vmem:[#allocation2] sm:$0xff] }
 0xa81   : > { %v2086_v61 = vpop.xlane.xlu0 %2085  ;;  %v2410_v11 = vld [vmem:[%s5973_s2] sm:$0xff] }
 0xa82   : > { %5763 = vrcp.f32 %v2086_v61 }
 0xa83   : > { %v5762_v62 = vpop.eup %5761 }
 0xa84   : > { %v2093_v8 = vmul.f32 %v5762_v62, %v5758_v52  ;;  %v2458_v52 = vld [vmem:[%s5973_s2 + $0x180] sm:$0xff] }
 0xa85   : > { %v2095_v63 = vpop.permute.xlu0 %2094  ;;  %v5046_v56 = vcombine.high %v2458_v52, %v2466_v54  ;;  %v5045_v58 = vcombine.low %v2458_v52, %v2466_v54 }
 0xa86   : > { %5512 = vmatpush3.msra.mxu1 %v2095_v63  ;;  %5519 = vmatmul.mubr.msk.f32.vlgmr.msra.gmra.mxu0 %vm1079_vm7, %v2093_v8  ;;  %v2442_v8 = vld [vmem:[%s5973_s2 + $0x100] sm:$0xff] }
 0xa87   : > { %5521 = vmatprep.subr.bf16.mxu1 %v5818_v29  ;;  %2913 = vmatprep.mubr.bf16.mxu0 %v5817_v19  ;;  %v2450_v63 = vld [vmem:[%s5973_s2 + $0x140] sm:$0xff] }
 0xa88   : > { %2889 = vmatprep.subr.bf16.mxu0 %v5046_v56  ;;  %v2428_v56 = vld [vmem:[%s5973_s2 + $0x90] sm:$0xff] }
 0xa89   : > { %v5581_v9 = vpop.permute.xlu0 %5580  ;;  %2890 = vmatpush1.bf16.msra.mxu0 %v5045_v58  ;;  %v2429_v58 = vld [vmem:[%s5973_s2 + $0x98] sm:$0xff] }
 0xa8a   : > { %v5583_v36 = vunpack.i.h.bf16 %v5581_v9  ;;  %v5582_v12 = vunpack.i.l.bf16 %v5581_v9 }
 0xa8c   : > { %v2273_v20 = vsel %vm2272_vm8, %v2270_v14, %v5582_v12  ;;  %v2411_v12 = vld [vmem:[%s5973_s2 + $0x8] sm:$0xff] }
 0xa8f   : > { %v5764_v44 = vpop.eup %5763 }
 0xa90   : > { %v2092_v53 = vmul.f32 %v5764_v44, %v5760_v55  ;;  %v2459_v55 = vld [vmem:[%s5973_s2 + $0x188] sm:$0xff] }
 0xa91   : > { %v5047_v61 = vcombine.low %v2459_v55, %v2467_v57  ;;  %v5048_v62 = vcombine.high %v2459_v55, %v2467_v57  ;;  %v2443_v44 = vld [vmem:[%s5973_s2 + $0x108] sm:$0xff]  ;;  %v2436_v57 = vld [vmem:[%s5973_s2 + $0xd0] sm:$0xff] }
 0xa92   : > { %5514 = vmatmul.mubr.msk.f32.vlgmr.msra.gmra.mxu1 %vm1079_vm7, %v2092_v53  ;;  %v5030_v53 = vcombine.high %v2442_v8, %v2450_v63 }
 0xa93   : > { %5529 = vmatprep.mubr.msk.bf16.mxu1 %vm5819_vm5, %v5818_v29  ;;  %5522 = vmatpush3.bf16.msra.mxu1 %v5601_v59  ;;  %v2451_v59 = vld [vmem:[%s5973_s2 + $0x148] sm:$0xff] }
 0xa94   : > { %5523 = vmatprep.subr.bf16.mxu1 %v5818_v29  ;;  %2891 = vmatprep.subr.bf16.mxu0 %v5030_v53  ;;  %v2412_v53 = vld [vmem:[%s5973_s2 + $0x10] sm:$0xff] }
 0xa97   : > { %5524 = vmatpush3.bf16.msra.mxu1 %v5602_v60  ;;  %v5029_v60 = vcombine.low %v2442_v8, %v2450_v63  ;;  %v5018_v63 = vcombine.high %v2428_v56, %v2436_v57 }
 0xa98   : > { %5525 = vmatprep.subr.bf16.mxu1 %v5818_v29 }
 0xa99   : > { %2892 = vmatpush1.bf16.msra.mxu0 %v5029_v60  ;;  %v2413_v60 = vld [vmem:[%s5973_s2 + $0x18] sm:$0xff] }
 0xa9b   : > { %5526 = vmatpush3.bf16.msra.mxu1 %v5603_v0  ;;  %v5031_v0 = vcombine.low %v2443_v44, %v2451_v59 }
 0xa9c   : > { %5527 = vmatprep.subr.bf16.mxu1 %v5818_v29  ;;  %v2271_v29 = vsel %vm925_vm6, %v6102_v17, %v5578_v10 }
 0xa9d   : > { %v2274_v21 = vsel %vm2272_vm8, %v2271_v29, %v5583_v36  ;;  %v2418_v36 = vld [vmem:[%s5973_s2 + $0x40] sm:$0xff]  ;;  %v2419_v29 = vld [vmem:[%s5973_s2 + $0x48] sm:$0xff] }
 0xa9e   : > { %v4997_v14 = vcombine.low %v2410_v11, %v2418_v36 }
 0xa9f   : > { %5528 = vmatpush3.bf16.msra.mxu1 %v5604_v3  ;;  %v2434_v3 = vld [vmem:[%s5973_s2 + $0xc0] sm:$0xff] }
 0xaa0   : > { %2932 = vmatprep.subr.bf16.mxu1 %v5048_v62 }
 0xb46   : > { %v2242_v1 = vpop.f32.mrf.mxu0 }
 0xb48   : > { %v5520_v2 = vpop.f32.mrf.mxu0 }
 0xb49   : > { %v2426_v2 = vld [vmem:[%s5973_s2 + $0x80] sm:$0xff] }
 0xb4a   : > { %v5013_v7 = vcombine.low %v2426_v2, %v2434_v3 }
 0xb52   : > { %v2166_v4 = vpop.f32.mrf.mxu1 }
 0xb53   : > { %v5584_v5 = vpack.i.bf16 %v2242_v1, %v2166_v4  ;;  %v5032_v1 = vcombine.high %v2443_v44, %v2451_v59  ;;  %v2427_v4 = vld [vmem:[%s5973_s2 + $0x88] sm:$0xff]  ;;  %v2420_v59 = vld [vmem:[%s5973_s2 + $0x50] sm:$0xff] }
 0xb54   : > { %v5515_v6 = vpop.f32.mrf.mxu1 }
 0xb55   : > { %5585 = vrot.lane.b32.xlu1 %v5584_v5, %s5821_s30  ;;  %v5014_v5 = vcombine.high %v2426_v2, %v2434_v3  ;;  %v2435_v6 = vld [vmem:[%s5973_s2 + $0xc8] sm:$0xff]  ;;  %s6648_s30 = scalar_lea.vmem %s6614_s8, %s5937_s29  ;;  %v5002_v3 = vcombine.high %v2412_v53, %v2420_v59 }
 0xb56   : > { %v5015_v9 = vcombine.low %v2427_v4, %v2435_v6  ;;  %v5016_v10 = vcombine.high %v2427_v4, %v2435_v6  ;;  %v2470_v6 = vld [vmem:[%s5973_s2 + $0x1e0] sm:$0xff] }
 0xb57   : > { %2893 = vmatprep.subr.bf16.mxu0 %v5014_v5  ;;  %v2462_v5 = vld [vmem:[%s5973_s2 + $0x1a0] sm:$0xff] }
 0xb58   : > { %2894 = vmatpush1.bf16.msra.mxu0 %v5013_v7  ;;  %v2463_v7 = vld [vmem:[%s5973_s2 + $0x1a8] sm:$0xff] }
 0xbc7   : > { %v5586_v13 = vpop.permute.xlu1 %5585 }
 0xbc8   : > { %v5588_v16 = vunpack.i.h.bf16 %v5586_v13  ;;  %v5587_v18 = vunpack.i.l.bf16 %v5586_v13  ;;  %v4998_v13 = vcombine.high %v2410_v11, %v2418_v36  ;;  %v5054_v36 = vcombine.high %v2462_v5, %v2470_v6 }
 0xbca   : > { %v2277_v39 = vsel %vm2275_vm9, %v2274_v21, %v5588_v16  ;;  %v2276_v22 = vsel %vm2275_vm9, %v2273_v20, %v5587_v18  ;;  %v4999_v16 = vcombine.low %v2411_v12, %v2419_v29  ;;  %v5000_v18 = vcombine.high %v2411_v12, %v2419_v29  ;;  %2895 = vmatprep.subr.bf16.mxu0 %v4998_v13  ;;  %v2460_v20 = vld [vmem:[%s5973_s2 + $0x190] sm:$0xff]  ;;  %v2446_v13 = vld [vmem:[%s5973_s2 + $0x120] sm:$0xff] }
 0xbcb   : > { %v2278_v23 = vpack.c.bf16 %v2277_v39, %v2276_v22  ;;  %2896 = vmatpush1.bf16.msra.mxu0 %v4997_v14  ;;  %v2468_v21 = vld [vmem:[%s5973_s2 + $0x1d0] sm:$0xff]  ;;  %v2461_v39 = vld [vmem:[%s5973_s2 + $0x198] sm:$0xff]  ;;  %v2454_v29 = vld [vmem:[%s5973_s2 + $0x160] sm:$0xff] }
 0xbcc   : > { %v5049_v22 = vcombine.low %v2460_v20, %v2468_v21  ;;  %v2447_v14 = vld [vmem:[%s5973_s2 + $0x128] sm:$0xff] }
 0xbcd   : > { %5530 = vmatmul.mubr.msk.bf16.vlgmr.msra.gmra.mxu1 %vm875_vm4, %v2278_v23  ;;  %v5050_v23 = vcombine.high %v2460_v20, %v2468_v21  ;;  %v5038_v21 = vcombine.high %v2446_v13, %v2454_v29 }
 0xbce   : > { %2956 = vmatprep.mubr.bf16.mxu1 %v5817_v19  ;;  %2933 = vmatpush1.bf16.msra.mxu1 %v5047_v61  ;;  %v2437_v61 = vld [vmem:[%s5973_s2 + $0xd8] sm:$0xff] }
 0xbcf   : > { %2934 = vmatprep.subr.bf16.mxu1 %v5032_v1  ;;  %2975 = vmatprep.subr.bf16.mxu0 %v5050_v23  ;;  %v5020_v44 = vcombine.high %v2429_v58, %v2437_v61  ;;  %v5017_v1 = vcombine.low %v2428_v56, %v2436_v57  ;;  %v5019_v2 = vcombine.low %v2429_v58, %v2437_v61  ;;  %v2438_v23 = vld [vmem:[%s5973_s2 + $0xe0] sm:$0xff]  ;;  %v2456_v56 = vld [vmem:[%s5973_s2 + $0x170] sm:$0xff]  ;;  %v2449_v57 = vld [vmem:[%s5973_s2 + $0x138] sm:$0xff] }
 0xbd0   : > { %v2457_v58 = vld [vmem:[%s5973_s2 + $0x178] sm:$0xff] }
 0xbd2   : > { %2935 = vmatpush1.bf16.msra.mxu1 %v5031_v0  ;;  %v2421_v0 = vld [vmem:[%s5973_s2 + $0x58] sm:$0xff] }
 0xbd3   : > { %2936 = vmatprep.subr.bf16.mxu1 %v5016_v10  ;;  %v5004_v4 = vcombine.high %v2413_v60, %v2421_v0  ;;  %v5001_v10 = vcombine.low %v2412_v53, %v2420_v59  ;;  %v5003_v11 = vcombine.low %v2413_v60, %v2421_v0  ;;  %v2440_v53 = vld [vmem:[%s5973_s2 + $0xf0] sm:$0xff]  ;;  %v2433_v59 = vld [vmem:[%s5973_s2 + $0xb8] sm:$0xff] }
 0xbd4   : > { %v2441_v60 = vld [vmem:[%s5973_s2 + $0xf8] sm:$0xff] }
 0xbd6   : > { %2937 = vmatpush1.bf16.msra.mxu1 %v5015_v9  ;;  %v2471_v9 = vld [vmem:[%s5973_s2 + $0x1e8] sm:$0xff] }
 0xbd7   : > { %2938 = vmatprep.subr.bf16.mxu1 %v5000_v18  ;;  %v5056_v12 = vcombine.high %v2463_v7, %v2471_v9  ;;  %v5053_v18 = vcombine.low %v2462_v5, %v2470_v6  ;;  %v5055_v20 = vcombine.low %v2463_v7, %v2471_v9  ;;  %v2424_v5 = vld [vmem:[%s5973_s2 + $0x70] sm:$0xff]  ;;  %v2417_v6 = vld [vmem:[%s5973_s2 + $0x38] sm:$0xff] }
 0xbd8   : > { %v2425_v7 = vld [vmem:[%s5973_s2 + $0x78] sm:$0xff] }
 0xbda   : > { %2939 = vmatpush1.bf16.msra.mxu1 %v4999_v16  ;;  %v2455_v16 = vld [vmem:[%s5973_s2 + $0x168] sm:$0xff] }
 0xc8d   : > { %v2355_v17 = vpop.f32.mrf.mxu1 }
 0xc8e   : > { %v2356_v25 = vadd.f32 %v4989_v24, %v2355_v17 }
 0xc8f   : > { %v5531_v26 = vpop.f32.mrf.mxu1 }
 0xc90   : > { %v2362_v27 = vadd.f32 %v5773_v15, %v2356_v25 }
 0xc91   : > { %v2358_v28 = vpop.f32.mrf.mxu1 }
 0xc92   : > { %v2359_v30 = vadd.f32 %v4989_v24, %v2358_v28  ;;  %v2366_v33 = vsel %vm875_vm4, %v2362_v27, 0.0  ;;  %v2469_v24 = vld [vmem:[%s5973_s2 + $0x1d8] sm:$0xff] }
 0xc93   : > { %2367 = vadd.xlane.f32.xlu0 %v2366_v33  ;;  %v5532_v34 = vpop.f32.mrf.mxu1  ;;  %v5051_v17 = vcombine.low %v2461_v39, %v2469_v24  ;;  %v5052_v25 = vcombine.high %v2461_v39, %v2469_v24  ;;  %v5040_v39 = vcombine.high %v2447_v14, %v2455_v16  ;;  %v2431_v24 = vld [vmem:[%s5973_s2 + $0xa8] sm:$0xff] }
 0xc94   : > { %v2363_v37 = vadd.f32 %v5774_v35, %v2359_v30 }
 0xc95   : > { %3018 = vmatprep.subr.bf16.mxu1 %v5052_v25  ;;  %v5037_v25 = vcombine.low %v2446_v13, %v2454_v29  ;;  %v5011_v13 = vcombine.low %v2417_v6, %v2425_v7  ;;  %v5606_v29 = vld [vmem:[%s5985_s19 + $0xf8] sm:$0xff]  }
 0xc96   : > { %v2369_v38 = vsel %vm875_vm4, %v2363_v37, 0.0 }
 0xc97   : > { %2370 = vadd.xlane.f32.xlu1 %v2369_v38 }
 0xd1c   : > { %v2368_v41 = vpop.xlane.xlu0 %2367 }
 0xd1d   : > { %v2373_v42 = vmul.f32 0.015625, %v2368_v41 }
 0xd1f   : > { %v6217_v43 = vsub.f32 %v2362_v27, %v2373_v42 }
 0xd20   : > { %v2371_v45 = vpop.xlane.xlu1 %2370 }
 0xd21   : > { %v2374_v46 = vmul.f32 0.015625, %v2371_v45  ;;  %v2377_v47 = vmul.f32 %v6217_v43, %v6217_v43  ;;  %v4996_v45 = vld [vmem:[%s6649_s5] ss:$0 sm:$0xff]  ;;  %s6651_s5 = sld [smem:[#allocation15_spill]] (!%p5200_p5) }
 0xd23   : > { %v6221_v48 = vsub.f32 %v2363_v37, %v2374_v46  ;;  %v2379_v49 = vsel %vm875_vm4, %v2377_v47, 0.0  ;;  %v4995_v37 = vld [vmem:[%s6648_s30] ss:$0 sm:$0xff]  ;;  %v2452_v47 = vld [vmem:[%s5973_s2 + $0x150] sm:$0xff] }
 0xd24   : > { %2380 = vadd.xlane.f32.xlu0 %v2379_v49  ;;  %v2445_v49 = vld [vmem:[%s5973_s2 + $0x118] sm:$0xff] }
 0xd25   : > { %v2378_v50 = vmul.f32 %v6221_v48, %v6221_v48 }
 0xd27   : > { %v2382_v51 = vsel %vm875_vm4, %v2378_v50, 0.0  ;;  %v2453_v50 = vld [vmem:[%s5973_s2 + $0x158] sm:$0xff] }
 0xd28   : > { %2383 = vadd.xlane.f32.xlu0 %v2382_v51  ;;  %v5035_v8 = vcombine.low %v2445_v49, %v2453_v50 }
 0xdad   : > { %v2381_v26 = vpop.xlane.xlu0 %2380 }
 0xdae   : > { %v2385_v15 = vmul.f32 0.015625, %v2381_v26  ;;  %v5039_v26 = vcombine.low %v2447_v14, %v2455_v16  ;;  %v5607_v14 = vld [vmem:[%s5985_s19 + $0x38] sm:$0xff]  }
 0xdaf   : > { %v5608_v16 = vld [vmem:[%s5985_s19 + $0xb8] sm:$0xff]  }
 0xdb0   : > { %v2387_v27 = vadd.f32 1e-05, %v2385_v15 }
 0xdb1   : > { %v2384_v28 = vpop.xlane.xlu0 %2383 }
 0xdb2   : > { %5765 = vrsqrt.f32 %v2387_v27  ;;  %v2386_v30 = vmul.f32 0.015625, %v2384_v28  ;;  %v2414_v28 = vld [vmem:[%s5973_s2 + $0x20] sm:$0xff] }
 0xdb4   : > { %v2388_v33 = vadd.f32 1e-05, %v2386_v30  ;;  %v2422_v30 = vld [vmem:[%s5973_s2 + $0x60] sm:$0xff] }
 0xdb6   : > { %5767 = vrsqrt.f32 %v2388_v33  ;;  %v2415_v33 = vld [vmem:[%s5973_s2 + $0x28] sm:$0xff] }
 0xdbf   : > { %v5766_v34 = vpop.eup %5765 }
 0xdc0   : > { %v2391_v35 = vmul.f32 %v5766_v34, %v6217_v43  ;;  %v2444_v43 = vld [vmem:[%s5973_s2 + $0x110] sm:$0xff]  ;;  %v2423_v34 = vld [vmem:[%s5973_s2 + $0x68] sm:$0xff] }
 0xdc1   : > { %v5034_v55 = vcombine.high %v2444_v43, %v2452_v47  ;;  %v5033_v62 = vcombine.low %v2444_v43, %v2452_v47  ;;  %v2473_v43 = vld [vmem:[%s5973_s2 + $0x1f8] sm:$0xff]  ;;  %v5005_v47 = vcombine.low %v2414_v28, %v2422_v30 }
 0xdc2   : > { %v2399_v41 = vmul.f32 %v4995_v37, %v2391_v35 }
 0xdc3   : > { %v5768_v38 = vpop.eup %5767 }
 0xdc4   : > { %v2392_v42 = vmul.f32 %v5768_v38, %v6221_v48  ;;  %v6263_v51 = vadd.f32 %v4996_v45, %v2399_v41  ;;  %v5036_v48 = vcombine.high %v2445_v49, %v2453_v50  ;;  %v5006_v38 = vcombine.high %v2414_v28, %v2422_v30  ;;  %v5622_v28 = vld [vmem:[%s5985_s19 + $0xd8] sm:$0xff]  }
 0xdc5   : > { %v5008_v41 = vcombine.high %v2415_v33, %v2423_v34  ;;  %v5007_v49 = vcombine.low %v2415_v33, %v2423_v34  ;;  %v5623_v30 = vld [vmem:[%s5985_s19 + $0x18] sm:$0xff]   ;;  %v5625_v34 = vld [vmem:[%s5985_s19 + $0x50] sm:$0xff]  }
 0xdc6   : > { %v2400_v46 = vmul.f32 %v4995_v37, %v2392_v42  ;;  %v2464_v42 = vld [vmem:[%s5973_s2 + $0x1b0] sm:$0xff]  ;;  %v5624_v33 = vld [vmem:[%s5985_s19 + $0x98] sm:$0xff]  }
 0xdc8   : > { %v6265_v52 = vadd.f32 %v4996_v45, %v2400_v46  ;;  %v2472_v45 = vld [vmem:[%s5973_s2 + $0x1f0] sm:$0xff]  ;;  %v2465_v46 = vld [vmem:[%s5973_s2 + $0x1b8] sm:$0xff] }
 0xdc9   : > { %v5058_v50 = vcombine.high %v2464_v42, %v2472_v45  ;;  %v5057_v61 = vcombine.low %v2464_v42, %v2472_v45  ;;  %v5630_v42 = vld [vmem:[%s5985_s19 + $0xc8] sm:$0xff]  }
 0xdca   : > { %v6269_v54 = vpack.c.bf16 %v6265_v52, %v6263_v51  ;;  %v5631_v45 = vld [vmem:[%s5985_s19 + $0x8] sm:$0xff]  }
 0xdcc   : > { %5061 = vmatmul.mubr.msk.bf16.vlgmr.msra.gmra.mxu0 %vm875_vm4, %v6269_v54  ;;  %5062 = vmatmul.mubr.msk.bf16.vlgmr.msra.gmra.mxu1 %vm875_vm4, %v6269_v54 }
 0xdcd   : > { %2976 = vmatpush1.bf16.msra.mxu0 %v5049_v22  ;;  %3019 = vmatpush1.bf16.msra.mxu1 %v5051_v17  ;;  %v2430_v22 = vld [vmem:[%s5973_s2 + $0xa0] sm:$0xff]  ;;  %v2439_v17 = vld [vmem:[%s5973_s2 + $0xe8] sm:$0xff] }
 0xdce   : > { %2977 = vmatprep.subr.bf16.mxu0 %v5034_v55  ;;  %3020 = vmatprep.subr.bf16.mxu1 %v5036_v48  ;;  %v5022_v15 = vcombine.high %v2430_v22, %v2438_v23  ;;  %v5024_v27 = vcombine.high %v2431_v24, %v2439_v17  ;;  %v5021_v35 = vcombine.low %v2430_v22, %v2438_v23  ;;  %v2448_v48 = vld [vmem:[%s5973_s2 + $0x130] sm:$0xff]  ;;  %v5613_v22 = vld [vmem:[%s5985_s19 + $0x68] sm:$0xff]  }
 0xdcf   : > { %2999 = vmatprep.mubr.bf16.mxu0 %v5817_v19  ;;  %3042 = vmatprep.mubr.bf16.mxu1 %v5817_v19  ;;  %v5023_v37 = vcombine.low %v2431_v24, %v2439_v17  ;;  %v5060_v55 = vcombine.high %v2465_v46, %v2473_v43  ;;  %v5041_v0 = vcombine.low %v2448_v48, %v2456_v56  ;;  %v5614_v23 = vld [vmem:[%s5985_s19 + $0xe8] sm:$0xff]  }
 0xdd0   : > { %v5615_v24 = vld [vmem:[%s5985_s19 + $0x28] sm:$0xff]  }
 0xdd1   : > { %2978 = vmatpush1.bf16.msra.mxu0 %v5033_v62  ;;  %3021 = vmatpush1.bf16.msra.mxu1 %v5035_v8  ;;  %v5059_v62 = vcombine.low %v2465_v46, %v2473_v43  ;;  %v5042_v8 = vcombine.high %v2448_v48, %v2456_v56  ;;  %v5616_v17 = vld [vmem:[%s5985_s19 + $0xa8] sm:$0xff]   ;;  %v5633_v43 = vld [vmem:[%s5985_s19 + $0x40] sm:$0xff]   ;;  %v5638_v48 = vld [vmem:[%s5985_s19 + $0x1f8] sm:$0xff]   ;;  %v2504_v56 = vsub.s32 6, %v6030_v31 }
 0xdd2   : > { %2979 = vmatprep.subr.bf16.mxu0 %v5018_v63  ;;  %3022 = vmatprep.subr.bf16.mxu1 %v5020_v44  ;;  %v5044_v63 = vcombine.high %v2449_v57, %v2457_v58  ;;  %v2432_v44 = vld [vmem:[%s5973_s2 + $0xb0] sm:$0xff]  ;;  %v5632_v46 = vld [vmem:[%s5985_s19 + $0x88] sm:$0xff]  }
 0xdd3   : > { %v5025_v9 = vcombine.low %v2432_v44, %v2440_v53 }
 0xdd5   : > { %2980 = vmatpush1.bf16.msra.mxu0 %v5017_v1  ;;  %3023 = vmatpush1.bf16.msra.mxu1 %v5019_v2  ;;  %v5043_v1 = vcombine.low %v2449_v57, %v2457_v58  ;;  %v5026_v2 = vcombine.high %v2432_v44, %v2440_v53  ;;  %v6369_v57 = vld [vmem:[%s5979_s18 + $0x8] sm:$0xff] }
 0xdd6   : > { %2981 = vmatprep.subr.bf16.mxu0 %v5002_v3  ;;  %3024 = vmatprep.subr.bf16.mxu1 %v5004_v4  ;;  %v5028_v3 = vcombine.high %v2433_v59, %v2441_v60  ;;  %v2416_v4 = vld [vmem:[%s5973_s2 + $0x30] sm:$0xff]  ;;  %v6374_v58 = vrot.slane %v6369_v57, %v2504_v56 }
 0xdd9   : > { %2982 = vmatpush1.bf16.msra.mxu0 %v5001_v10  ;;  %3025 = vmatpush1.bf16.msra.mxu1 %v5003_v11  ;;  %v5027_v10 = vcombine.low %v2433_v59, %v2441_v60  ;;  %v5010_v11 = vcombine.high %v2416_v4, %v2424_v5 }
 0xdda   : > { %3061 = vmatprep.subr.bf16.mxu0 %v5054_v36  ;;  %3104 = vmatprep.subr.bf16.mxu1 %v5056_v12  ;;  %v5012_v36 = vcombine.high %v2417_v6, %v2425_v7  ;;  %v5009_v12 = vcombine.low %v2416_v4, %v2424_v5 }
 0xddc   : > { %5063 = vmatmul.mubr.msk.bf16.vlgmr.msra.gmra.mxu0 %vm875_vm4, %v6269_v54  ;;  %5064 = vmatmul.mubr.msk.bf16.vlgmr.msra.gmra.mxu1 %vm875_vm4, %v6269_v54 }
 0xddd   : > { %3062 = vmatpush1.bf16.msra.mxu0 %v5053_v18  ;;  %3105 = vmatpush1.bf16.msra.mxu1 %v5055_v20  ;;  %v5609_v18 = vld [vmem:[%s5985_s19 + $0x70] sm:$0xff]  }
 0xdde   : > { %3063 = vmatprep.subr.bf16.mxu0 %v5038_v21  ;;  %3106 = vmatprep.subr.bf16.mxu1 %v5040_v39  ;;  %v5610_v20 = vld [vmem:[%s5985_s19 + $0xf0] sm:$0xff]  }
 0xddf   : > { %3085 = vmatprep.mubr.bf16.mxu0 %v5817_v19  ;;  %3128 = vmatprep.mubr.bf16.mxu1 %v5817_v19  ;;  %v5611_v21 = vld [vmem:[%s5985_s19 + $0x30] sm:$0xff]  }
 0xde0   : > { %v5612_v39 = vld [vmem:[%s5985_s19 + $0xb0] sm:$0xff]  }
 0xde1   : > { %3064 = vmatpush1.bf16.msra.mxu0 %v5037_v25  ;;  %3107 = vmatpush1.bf16.msra.mxu1 %v5039_v26  ;;  %v5618_v25 = vld [vmem:[%s5985_s19 + $0xe0] sm:$0xff]  }
 0xde2   : > { %3065 = vmatprep.subr.bf16.mxu0 %v5022_v15  ;;  %3108 = vmatprep.subr.bf16.mxu1 %v5024_v27  ;;  %v5619_v26 = vld [vmem:[%s5985_s19 + $0x20] sm:$0xff]   ;;  %v5621_v27 = vld [vmem:[%s5985_s19 + $0x58] sm:$0xff]  }
 0xde3   : > { %v5620_v15 = vld [vmem:[%s5985_s19 + $0xa0] sm:$0xff]  }
 0xde5   : > { %3066 = vmatpush1.bf16.msra.mxu0 %v5021_v35  ;;  %3109 = vmatpush1.bf16.msra.mxu1 %v5023_v37  ;;  %v5626_v35 = vld [vmem:[%s5985_s19 + $0xd0] sm:$0xff]  }
 0xde6   : > { %3067 = vmatprep.subr.bf16.mxu0 %v5006_v38  ;;  %3110 = vmatprep.subr.bf16.mxu1 %v5008_v41  ;;  %v5627_v37 = vld [vmem:[%s5985_s19 + $0x10] sm:$0xff]   ;;  %v5629_v41 = vld [vmem:[%s5985_s19 + $0x48] sm:$0xff]  }
 0xde7   : > { %v5628_v38 = vld [vmem:[%s5985_s19 + $0x90] sm:$0xff]  }
 0xde9   : > { %3068 = vmatpush1.bf16.msra.mxu0 %v5005_v47  ;;  %3111 = vmatpush1.bf16.msra.mxu1 %v5007_v49  ;;  %v5634_v47 = vld [vmem:[%s5985_s19 + $0xc0] sm:$0xff]  }
 0xdea   : > { %3147 = vmatprep.subr.bf16.mxu0 %v5058_v50  ;;  %3190 = vmatprep.subr.bf16.mxu1 %v5060_v55  ;;  %v5635_v49 = vld [vmem:[%s5985_s19] sm:$0xff]   ;;  %v5637_v55 = vld [vmem:[%s5985_s19 + $0x178] sm:$0xff]  }
 0xdeb   : > { %v5636_v50 = vld [vmem:[%s5985_s19 + $0x80] sm:$0xff]  }
 0xdec   : > { %5065 = vmatmul.mubr.msk.bf16.vlgmr.msra.gmra.mxu0 %vm875_vm4, %v6269_v54  ;;  %5066 = vmatmul.mubr.msk.bf16.vlgmr.msra.gmra.mxu1 %vm875_vm4, %v6269_v54 }
 0xded   : > { %3148 = vmatpush1.bf16.msra.mxu0 %v5057_v61  ;;  %3191 = vmatpush1.bf16.msra.mxu1 %v5059_v62  ;;  %v2492_v61 = vsub.s32 3, %v6030_v31  ;;  %v2488_v62 = vsub.s32 2, %v6030_v31 }
 0xdee   : > { %3149 = vmatprep.subr.bf16.mxu0 %v5042_v8  ;;  %3192 = vmatprep.subr.bf16.mxu1 %v5044_v63  ;;  %v6379_v8 = vld [vmem:[%s5979_s18] sm:$0xff] }
 0xdef   : > { %3171 = vmatprep.mubr.bf16.mxu0 %v5817_v19  ;;  %3214 = vmatprep.mubr.bf16.mxu1 %v5817_v19  ;;  %v5605_v19 = vld [vmem:[%s5985_s19 + $0x78] sm:$0xff]   ;;  %v2485_v53 = vrot.slane %v6379_v8, %v6048_v40  ;;  %v2493_v59 = vrot.slane %v6379_v8, %v2492_v61  ;;  %v2481_v60 = vrot.slane %v6379_v8, %v6037_v32 }
 0xdf1   : > { %3150 = vmatpush1.bf16.msra.mxu0 %v5041_v0  ;;  %3193 = vmatpush1.bf16.msra.mxu1 %v5043_v1  ;;  %v2489_v0 = vrot.slane %v6379_v8, %v2488_v62 }
 0xdf2   : > { %3151 = vmatprep.subr.bf16.mxu0 %v5026_v2  ;;  %3194 = vmatprep.subr.bf16.mxu1 %v5028_v3 }
 0xdf5   : > { %3152 = vmatpush1.bf16.msra.mxu0 %v5025_v9  ;;  %3195 = vmatpush1.bf16.msra.mxu1 %v5027_v10 }
 0xdf6   : > { %3153 = vmatprep.subr.bf16.mxu0 %v5010_v11  ;;  %3196 = vmatprep.subr.bf16.mxu1 %v5012_v36 }
 0xdf9   : > { %3154 = vmatpush1.bf16.msra.mxu0 %v5009_v12  ;;  %3197 = vmatpush1.bf16.msra.mxu1 %v5011_v13 }
 0xdfa   : > { %5254 = vmatprep.subr.bf16.mxu0 %v5605_v19  ;;  %5276 = vmatprep.subr.bf16.mxu1 %v5606_v29 }
 0xdfc   : > { %5067 = vmatmul.mubr.msk.bf16.vlgmr.msra.gmra.mxu0 %vm875_vm4, %v6269_v54  ;;  %5068 = vmatmul.mubr.msk.bf16.vlgmr.msra.gmra.mxu1 %vm875_vm4, %v6269_v54  ;;  %v5617_v54 = vld [vmem:[%s5985_s19 + $0x60] sm:$0xff]  }
 0xdfd   : > { %5255 = vmatpush3.bf16.msra.mxu0 %v5607_v14  ;;  %5277 = vmatpush3.bf16.msra.mxu1 %v5608_v16 }
 0xdfe   : > { %5256 = vmatprep.subr.bf16.mxu0 %v5609_v18  ;;  %5278 = vmatprep.subr.bf16.mxu1 %v5610_v20 }
 0xe01   : > { %5257 = vmatpush3.bf16.msra.mxu0 %v5611_v21  ;;  %5279 = vmatpush3.bf16.msra.mxu1 %v5612_v39 }
 0xe02   : > { %5258 = vmatprep.subr.bf16.mxu0 %v5613_v22  ;;  %5280 = vmatprep.subr.bf16.mxu1 %v5614_v23 }
 0xe05   : > { %5259 = vmatpush3.bf16.msra.mxu0 %v5615_v24  ;;  %5281 = vmatpush3.bf16.msra.mxu1 %v5616_v17  ;;  %v5639_v17 = vld [vmem:[%s5985_s19 + $0x138] sm:$0xff]  }
 0xe06   : > { %5260 = vmatprep.subr.bf16.mxu0 %v5617_v54  ;;  %5282 = vmatprep.subr.bf16.mxu1 %v5618_v25  ;;  %v5640_v54 = vld [vmem:[%s5985_s19 + $0x1b8] sm:$0xff]  }
 0xe09   : > { %5261 = vmatpush3.bf16.msra.mxu0 %v5619_v26  ;;  %5283 = vmatpush3.bf16.msra.mxu1 %v5620_v15  ;;  %v5641_v15 = vld [vmem:[%s5985_s19 + $0x170] sm:$0xff]  }
 0xe0a   : > { %5262 = vmatprep.subr.bf16.mxu0 %v5621_v27  ;;  %5284 = vmatprep.subr.bf16.mxu1 %v5622_v28  ;;  %v5642_v27 = vld [vmem:[%s5985_s19 + $0x1f0] sm:$0xff]   ;;  %v2500_v28 = vsub.s32 5, %v6030_v31 }
 0xe0d   : > { %5263 = vmatpush3.bf16.msra.mxu0 %v5623_v30  ;;  %5285 = vmatpush3.bf16.msra.mxu1 %v5624_v33  ;;  %v2508_v30 = vsub.s32 7, %v6030_v31  ;;  %v5643_v33 = vld [vmem:[%s5985_s19 + $0x130] sm:$0xff]  }
 0xe0e   : > { %5264 = vmatprep.subr.bf16.mxu0 %v5625_v34  ;;  %5286 = vmatprep.subr.bf16.mxu1 %v5626_v35  ;;  %v5644_v34 = vld [vmem:[%s5985_s19 + $0x1b0] sm:$0xff]  }
 0xe11   : > { %5265 = vmatpush3.bf16.msra.mxu0 %v5627_v37  ;;  %5287 = vmatpush3.bf16.msra.mxu1 %v5628_v38  ;;  %v5645_v38 = vld [vmem:[%s5985_s19 + $0x168] sm:$0xff]  }
 0xe12   : > { %5266 = vmatprep.subr.bf16.mxu0 %v5629_v41  ;;  %5288 = vmatprep.subr.bf16.mxu1 %v5630_v42  ;;  %v5646_v41 = vld [vmem:[%s5985_s19 + $0x1e8] sm:$0xff]   ;;  %v2501_v42 = vrot.slane %v6379_v8, %v2500_v28 }
 0xe15   : > { %5267 = vmatpush3.bf16.msra.mxu0 %v5631_v45  ;;  %5289 = vmatpush3.bf16.msra.mxu1 %v5632_v46  ;;  %v2509_v45 = vrot.slane %v6379_v8, %v2508_v30 }
 0xe16   : > { %5268 = vmatprep.subr.bf16.mxu0 %v5633_v43  ;;  %5290 = vmatprep.subr.bf16.mxu1 %v5634_v47  ;;  %v5647_v47 = vld [vmem:[%s5985_s19 + $0x128] sm:$0xff]  }
 0xe19   : > { %5269 = vmatpush3.bf16.msra.mxu0 %v5635_v49  ;;  %5291 = vmatpush3.bf16.msra.mxu1 %v5636_v50  ;;  %v5648_v49 = vld [vmem:[%s5985_s19 + $0x1a8] sm:$0xff]  }
 0xe1a   : > { %5298 = vmatprep.subr.bf16.mxu0 %v5637_v55  ;;  %5320 = vmatprep.subr.bf16.mxu1 %v5638_v48  ;;  %v5649_v48 = vld [vmem:[%s5985_s19 + $0x160] sm:$0xff]  }
 0xe8c   : > { %v2915_v63 = vpop.f32.mrf.mxu0  ;;  %v2958_v44 = vpop.f32.mrf.mxu1 }
 0xe8d   : > { %v2916_v10 = vadd.f32 %v2915_v63, %v2481_v60  ;;  %v2959_v11 = vadd.f32 %v2958_v44, %v2489_v0  ;;  %v5650_v63 = vld [vmem:[%s5985_s19 + $0x1e0] sm:$0xff]  }
 0xe8e   : > { %v2917_v1 = vpop.f32.mrf.mxu0  ;;  %v2960_v2 = vpop.f32.mrf.mxu1 }
 0xe8f   : > { %v2918_v5 = vadd.f32 %v2917_v1, %v2485_v53  ;;  %v2961_v6 = vadd.f32 %v2960_v2, %v2493_v59  ;;  %v3225_v39 = vmax.f32 %v2916_v10, 0.0  ;;  %v3227_v22 = vmax.f32 %v2959_v11, 0.0  ;;  %v5651_v2 = vld [vmem:[%s5985_s19 + $0x120] sm:$0xff]  }
 0xe90   : > { %v2919_v3 = vpop.f32.mrf.mxu0  ;;  %v2962_v4 = vpop.f32.mrf.mxu1 }
 0xe91   : > { %v2920_v7 = vadd.f32 %v2919_v3, %v2481_v60  ;;  %v2963_v9 = vadd.f32 %v2962_v4, %v2489_v0  ;;  %v3226_v16 = vmax.f32 %v2918_v5, 0.0  ;;  %v3228_v18 = vmax.f32 %v2961_v6, 0.0  ;;  %v5652_v3 = vld [vmem:[%s5985_s19 + $0x1a0] sm:$0xff]   ;;  %v5653_v4 = vld [vmem:[%s5985_s19 + $0x158] sm:$0xff]  }
 0xe92   : > { %v2921_v36 = vpop.f32.mrf.mxu0  ;;  %v2964_v12 = vpop.f32.mrf.mxu1  ;;  %v5654_v5 = vld [vmem:[%s5985_s19 + $0x1d8] sm:$0xff]  }
 0xe93   : > { %v2922_v13 = vadd.f32 %v2921_v36, %v2485_v53  ;;  %v2965_v19 = vadd.f32 %v2964_v12, %v2493_v59  ;;  %v3241_v29 = vmax.f32 %v2920_v7, 0.0  ;;  %v3243_v14 = vmax.f32 %v2963_v9, 0.0  ;;  %v5655_v12 = vld [vmem:[%s5985_s19 + $0x118] sm:$0xff]  }
 0xe95   : > { %v3242_v20 = vmax.f32 %v2922_v13, 0.0  ;;  %v3244_v21 = vmax.f32 %v2965_v19, 0.0  ;;  %v3257_v25 = vpack.c.bf16 %v3241_v29, %v3225_v39  ;;  %v3259_v26 = vpack.c.bf16 %v3243_v14, %v3227_v22  ;;  %v5656_v13 = vld [vmem:[%s5985_s19 + $0x198] sm:$0xff]   ;;  %v5657_v19 = vld [vmem:[%s5985_s19 + $0x150] sm:$0xff]   ;;  %v5661_v39 = vld [vmem:[%s5985_s19 + $0x148] sm:$0xff]  }
 0xe96   : > { %v5658_v29 = vld [vmem:[%s5985_s19 + $0x1d0] sm:$0xff]   ;;  %v2496_v14 = vsub.s32 4, %v6030_v31  ;;  %v5662_v22 = vld [vmem:[%s5985_s19 + $0x1c8] sm:$0xff]  }
 0xe97   : > { %v3258_v23 = vpack.c.bf16 %v3242_v20, %v3226_v16  ;;  %v3260_v24 = vpack.c.bf16 %v3244_v21, %v3228_v18  ;;  %v5659_v16 = vld [vmem:[%s5985_s19 + $0x110] sm:$0xff]  }
 0xe98   : > { %v5660_v18 = vld [vmem:[%s5985_s19 + $0x190] sm:$0xff]  }
 0xe99   : > { %4336 = vmatprep.mubr.bf16.mxu0 %v3258_v23  ;;  %4377 = vmatprep.mubr.bf16.mxu1 %v3260_v24  ;;  %v2497_v23 = vrot.slane %v6379_v8, %v2496_v14  ;;  %v2505_v24 = vrot.slane %v6379_v8, %v2504_v56  ;;  %v5665_v8 = vld [vmem:[%s5985_s19 + $0x140] sm:$0xff]  }
 0xe9a   : > { %4337 = vmatmul.mubr.bf16.vlgmr.msra.gmra.mxu0 %v3257_v25  ;;  %4378 = vmatmul.mubr.bf16.vlgmr.msra.gmra.mxu1 %v3259_v26  ;;  %v2517_v25 = vrot.slane %v6369_v57, %v6048_v40  ;;  %v5663_v26 = vld [vmem:[%s5985_s19 + $0x108] sm:$0xff]   ;;  %v5666_v40 = vld [vmem:[%s5985_s19 + $0x1c0] sm:$0xff]  }
 0xe9b   : > { %5299 = vmatpush3.bf16.msra.mxu0 %v5639_v17  ;;  %5321 = vmatpush3.bf16.msra.mxu1 %v5640_v54 }
 0xe9c   : > { %v6399_v35 = vpop.f32.mrf.mxu0  ;;  %v6401_v37 = vpop.f32.mrf.mxu1  ;;  %5300 = vmatprep.subr.bf16.mxu0 %v5641_v15  ;;  %5322 = vmatprep.subr.bf16.mxu1 %v5642_v27  ;;  %v5664_v15 = vld [vmem:[%s5985_s19 + $0x188] sm:$0xff]  }
 0xe9e   : > { %v3003_v46 = vpop.f32.mrf.mxu0  ;;  %v3046_v43 = vpop.f32.mrf.mxu1 }
 0xe9f   : > { %5301 = vmatpush3.bf16.msra.mxu0 %v5643_v33  ;;  %5323 = vmatpush3.bf16.msra.mxu1 %v5644_v34  ;;  %v3004_v44 = vadd.f32 %v3003_v46, %v2501_v42  ;;  %v3047_v53 = vadd.f32 %v3046_v43, %v2509_v45  ;;  %v2525_v34 = vrot.slane %v6369_v57, %v2492_v61 }
 0xea0   : > { %v3005_v50 = vpop.f32.mrf.mxu0  ;;  %v3048_v55 = vpop.f32.mrf.mxu1  ;;  %5302 = vmatprep.subr.bf16.mxu0 %v5645_v38  ;;  %5324 = vmatprep.subr.bf16.mxu1 %v5646_v41  ;;  %v3002_v41 = vadd.f32 %v6399_v35, %v2497_v23  ;;  %v5669_v35 = vld [vmem:[%s5985_s19 + $0x278] sm:$0xff]  }
 0xea1   : > { %v3230_v6 = vmax.f32 %v3004_v44, 0.0  ;;  %v3232_v7 = vmax.f32 %v3047_v53, 0.0  ;;  %v3006_v27 = vadd.f32 %v3005_v50, %v2497_v23  ;;  %v3049_v33 = vadd.f32 %v3048_v55, %v2505_v24  ;;  %v5668_v50 = vld [vmem:[%s5985_s19 + $0x180] sm:$0xff]   ;;  %v5670_v44 = vld [vmem:[%s5985_s19 + $0x2f8] sm:$0xff]  }
 0xea2   : > { %v3007_v59 = vpop.f32.mrf.mxu0  ;;  %v3050_v60 = vpop.f32.mrf.mxu1  ;;  %v3229_v53 = vmax.f32 %v3002_v41, 0.0 }
 0xea3   : > { %v3008_v0 = vadd.f32 %v3007_v59, %v2501_v42  ;;  %v3051_v1 = vadd.f32 %v3050_v60, %v2509_v45  ;;  %5303 = vmatpush3.bf16.msra.mxu0 %v5647_v47  ;;  %5325 = vmatpush3.bf16.msra.mxu1 %v5648_v49  ;;  %v3045_v42 = vadd.f32 %v6401_v37, %v2505_v24  ;;  %v5667_v49 = vld [vmem:[%s5985_s19 + $0x100] sm:$0xff]   ;;  %v3245_v55 = vmax.f32 %v3006_v27, 0.0  ;;  %v5688_v27 = vld [vmem:[%s5985_s19 + $0x298] sm:$0xff]  }
 0xea4   : > { %5304 = vmatprep.subr.bf16.mxu0 %v5649_v48  ;;  %5326 = vmatprep.subr.bf16.mxu1 %v5650_v63  ;;  %v3247_v48 = vmax.f32 %v3049_v33, 0.0  ;;  %v5684_v24 = vld [vmem:[%s5985_s19 + $0x2a0] sm:$0xff]   ;;  %v5689_v33 = vld [vmem:[%s5985_s19 + $0x250] sm:$0xff]  }
 0xea5   : > { %v3246_v9 = vmax.f32 %v3008_v0, 0.0  ;;  %v3248_v10 = vmax.f32 %v3051_v1, 0.0  ;;  %v3231_v59 = vmax.f32 %v3045_v42, 0.0  ;;  %v5671_v1 = vld [vmem:[%s5985_s19 + $0x238] sm:$0xff]   ;;  %v5692_v42 = vld [vmem:[%s5985_s19 + $0x290] sm:$0xff]  }
 0xea7   : > { %v3262_v11 = vpack.c.bf16 %v3246_v9, %v3230_v6  ;;  %v3264_v36 = vpack.c.bf16 %v3248_v10, %v3232_v7  ;;  %5305 = vmatpush3.bf16.msra.mxu0 %v5651_v2  ;;  %5327 = vmatpush3.bf16.msra.mxu1 %v5652_v3  ;;  %v3261_v2 = vpack.c.bf16 %v3245_v55, %v3229_v53  ;;  %v5673_v7 = vld [vmem:[%s5985_s19 + $0x270] sm:$0xff]  }
 0xea8   : > { %5306 = vmatprep.subr.bf16.mxu0 %v5653_v4  ;;  %5328 = vmatprep.subr.bf16.mxu1 %v5654_v5  ;;  %v3263_v3 = vpack.c.bf16 %v3247_v48, %v3231_v59  ;;  %v5672_v5 = vld [vmem:[%s5985_s19 + $0x2b8] sm:$0xff]   ;;  %v5674_v9 = vld [vmem:[%s5985_s19 + $0x2f0] sm:$0xff]   ;;  %v2533_v55 = vrot.slane %v6369_v57, %v2500_v28  ;;  %v5699_v59 = vld [vmem:[%s5985_s19 + $0x200] sm:$0xff]  }
 0xea9   : > { %4418 = vmatprep.mubr.bf16.mxu0 %v3262_v11  ;;  %4459 = vmatprep.mubr.bf16.mxu1 %v3264_v36  ;;  %v5675_v11 = vld [vmem:[%s5985_s19 + $0x230] sm:$0xff]  }
 0xeaa   : > { %v5676_v36 = vld [vmem:[%s5985_s19 + $0x2b0] sm:$0xff]  }
 0xeab   : > { %5307 = vmatpush3.bf16.msra.mxu0 %v5655_v12  ;;  %5329 = vmatpush3.bf16.msra.mxu1 %v5656_v13  ;;  %v5677_v12 = vld [vmem:[%s5985_s19 + $0x268] sm:$0xff]  }
 0xeac   : > { %v6426_v20 = vpop.f32.mrf.mxu0  ;;  %v6428_v21 = vpop.f32.mrf.mxu1  ;;  %5308 = vmatprep.subr.bf16.mxu0 %v5657_v19  ;;  %5330 = vmatprep.subr.bf16.mxu1 %v5658_v29  ;;  %v5678_v13 = vld [vmem:[%s5985_s19 + $0x2e8] sm:$0xff]  }
 0xead   : > { %v5679_v19 = vld [vmem:[%s5985_s19 + $0x228] sm:$0xff]  }
 0xeae   : > { %v3089_v17 = vpop.f32.mrf.mxu0  ;;  %v3132_v54 = vpop.f32.mrf.mxu1  ;;  %v5680_v29 = vld [vmem:[%s5985_s19 + $0x2a8] sm:$0xff]  }
 0xeaf   : > { %5309 = vmatpush3.bf16.msra.mxu0 %v5659_v16  ;;  %5331 = vmatpush3.bf16.msra.mxu1 %v5660_v18  ;;  %v3090_v43 = vadd.f32 %v3089_v17, %v2517_v25  ;;  %v3133_v63 = vadd.f32 %v3132_v54, %v2525_v34  ;;  %v5681_v16 = vld [vmem:[%s5985_s19 + $0x260] sm:$0xff]   ;;  %v5685_v17 = vld [vmem:[%s5985_s19 + $0x258] sm:$0xff]  }
 0xeb0   : > { %v6445_v38 = vpop.f32.mrf.mxu0  ;;  %v6447_v56 = vpop.f32.mrf.mxu1  ;;  %5310 = vmatprep.subr.bf16.mxu0 %v5661_v39  ;;  %5332 = vmatprep.subr.bf16.mxu1 %v5662_v22  ;;  %v5682_v18 = vld [vmem:[%s5985_s19 + $0x2e0] sm:$0xff]   ;;  %v5686_v54 = vld [vmem:[%s5985_s19 + $0x2d8] sm:$0xff]  }
 0xeb1   : > { %v3234_v0 = vmax.f32 %v3090_v43, 0.0  ;;  %v3236_v4 = vmax.f32 %v3133_v63, 0.0  ;;  %v5683_v22 = vld [vmem:[%s5985_s19 + $0x220] sm:$0xff]   ;;  %v2513_v43 = vrot.slane %v6369_v57, %v6037_v32  ;;  %v5696_v63 = vld [vmem:[%s5985_s19 + $0x288] sm:$0xff]  }
 0xeb2   : > { %v3093_v45 = vpop.f32.mrf.mxu0  ;;  %v3136_v46 = vpop.f32.mrf.mxu1  ;;  %v5697_v32 = vld [vmem:[%s5985_s19 + $0x240] sm:$0xff]  }
 0xeb3   : > { %v3094_v61 = vadd.f32 %v3093_v45, %v2517_v25  ;;  %v3137_v47 = vadd.f32 %v3136_v46, %v2525_v34  ;;  %5311 = vmatpush3.bf16.msra.mxu0 %v5663_v26  ;;  %5333 = vmatpush3.bf16.msra.mxu1 %v5664_v15  ;;  %v5687_v26 = vld [vmem:[%s5985_s19 + $0x218] sm:$0xff]   ;;  %v5690_v34 = vld [vmem:[%s5985_s19 + $0x2d0] sm:$0xff]   ;;  %v5693_v45 = vld [vmem:[%s5985_s19 + $0x248] sm:$0xff]  }
 0xeb4   : > { %5312 = vmatprep.subr.bf16.mxu0 %v5665_v8  ;;  %5334 = vmatprep.subr.bf16.mxu1 %v5666_v40  ;;  %v5691_v40 = vld [vmem:[%s5985_s19 + $0x210] sm:$0xff]   ;;  %v5694_v46 = vld [vmem:[%s5985_s19 + $0x2c8] sm:$0xff]  }
 0xeb5   : > { %v3250_v37 = vmax.f32 %v3094_v61, 0.0  ;;  %v3252_v60 = vmax.f32 %v3137_v47, 0.0  ;;  %v2521_v61 = vrot.slane %v6369_v57, %v2488_v62  ;;  %v2541_v62 = vrot.slane %v6369_v57, %v2508_v30 }
 0xeb7   : > { %5313 = vmatpush3.bf16.msra.mxu0 %v5667_v49  ;;  %5335 = vmatpush3.bf16.msra.mxu1 %v5668_v50  ;;  %v3266_v6 = vpack.c.bf16 %v3250_v37, %v3234_v0  ;;  %v3268_v10 = vpack.c.bf16 %v3252_v60, %v3236_v4  ;;  %v5695_v49 = vld [vmem:[%s5985_s19 + $0x208] sm:$0xff]   ;;  %v3092_v50 = vadd.f32 %v6445_v38, %v2513_v43  ;;  %v5698_v38 = vld [vmem:[%s5985_s19 + $0x2c0] sm:$0xff]  }
 0xeb8   : > { %5342 = vmatprep.subr.bf16.mxu0 %v5669_v35  ;;  %5364 = vmatprep.subr.bf16.mxu1 %v5670_v44  ;;  %v3135_v35 = vadd.f32 %v6447_v56, %v2521_v61  ;;  %v3088_v44 = vadd.f32 %v6426_v20, %v2513_v43  ;;  %v3131_v28 = vadd.f32 %v6428_v21, %v2521_v61  ;;  %v5700_v56 = vld [vmem:[%s5985_s19 + $0x280] sm:$0xff]   ;;  %v5723_v43 = vld [vmem:[%s5985_s19 + $0x310] sm:$0xff]  }
 0xeb9   : > { %v3249_v60 = vmax.f32 %v3092_v50, 0.0  ;;  %v5724_v61 = vld [vmem:[%s5985_s19 + $0x390] sm:$0xff]   ;;  %v2529_v50 = vrot.slane %v6369_v57, %v2496_v14  ;;  %v5731_v57 = vld [vmem:[%s5985_s19 + $0x300] sm:$0xff]  }
 0xeba   : > { %4419 = vmatmul.mubr.bf16.vlgmr.msra.gmra.mxu0 %v3261_v2  ;;  %4460 = vmatmul.mubr.bf16.vlgmr.msra.gmra.mxu1 %v3263_v3  ;;  %v3251_v30 = vmax.f32 %v3135_v35, 0.0  ;;  %v5702_v3 = vld [vmem:[%s5985_s19 + $0x3f8] sm:$0xff]   ;;  %v3233_v20 = vmax.f32 %v3088_v44, 0.0  ;;  %v3235_v21 = vmax.f32 %v3131_v28, 0.0 }
 0xebb   : > { %5343 = vmatpush3.bf16.msra.mxu0 %v5671_v1  ;;  %4500 = vmatprep.mubr.bf16.mxu0 %v3266_v6  ;;  %v5701_v1 = vld [vmem:[%s5985_s19 + $0x378] sm:$0xff]  }
 0xebc   : > { %5365 = vmatpush3.bf16.msra.mxu1 %v5672_v5  ;;  %4541 = vmatprep.mubr.bf16.mxu1 %v3268_v10  ;;  %v6469_v39 = vpop.f32.mrf.mxu0  ;;  %v6472_v23 = vpop.f32.mrf.mxu1  ;;  %v5703_v6 = vld [vmem:[%s5985_s19 + $0x338] sm:$0xff]  }
 0xebd   : > { %5344 = vmatprep.subr.bf16.mxu0 %v5673_v7  ;;  %5366 = vmatprep.subr.bf16.mxu1 %v5674_v9  ;;  %v3265_v7 = vpack.c.bf16 %v3249_v60, %v3233_v20  ;;  %v5704_v10 = vld [vmem:[%s5985_s19 + $0x3b8] sm:$0xff]   ;;  %v3217_v31 = vadd.f32 %v6472_v23, %v6374_v58 }
 0xebe   : > { %v3175_v25 = vpop.f32.mrf.mxu0  ;;  %v3218_v15 = vpop.f32.mrf.mxu1 }
 0xebf   : > { %5345 = vmatpush3.bf16.msra.mxu0 %v5675_v11  ;;  %v3176_v0 = vadd.f32 %v3175_v25, %v2533_v55  ;;  %v3219_v2 = vadd.f32 %v3218_v15, %v2541_v62  ;;  %v3267_v11 = vpack.c.bf16 %v3251_v30, %v3235_v21  ;;  %v5713_v25 = vld [vmem:[%s5985_s19 + $0x360] sm:$0xff]   ;;  %v3239_v28 = vmax.f32 %v3217_v31, 0.0 }
 0xec0   : > { %5367 = vmatpush3.bf16.msra.mxu1 %v5676_v36  ;;  %5346 = vmatprep.subr.bf16.mxu0 %v5677_v12  ;;  %v6481_v8 = vpop.f32.mrf.mxu0  ;;  %v6484_v41 = vpop.f32.mrf.mxu1  ;;  %v5705_v12 = vld [vmem:[%s5985_s19 + $0x370] sm:$0xff]   ;;  %v5715_v15 = vld [vmem:[%s5985_s19 + $0x320] sm:$0xff]  }
 0xec1   : > { %5368 = vmatprep.subr.bf16.mxu1 %v5678_v13  ;;  %v3238_v9 = vmax.f32 %v3176_v0, 0.0  ;;  %v3240_v36 = vmax.f32 %v3219_v2, 0.0  ;;  %v3221_v35 = vadd.f32 %v6484_v41, %v6374_v58 }
 0xec2   : > { %v3179_v47 = vpop.f32.mrf.mxu0  ;;  %v3222_v48 = vpop.f32.mrf.mxu1 }
 0xec3   : > { %5347 = vmatpush3.bf16.msra.mxu0 %v5679_v19  ;;  %v3180_v37 = vadd.f32 %v3179_v47, %v2533_v55  ;;  %v3223_v53 = vadd.f32 %v3222_v48, %v2541_v62  ;;  %v5706_v19 = vld [vmem:[%s5985_s19 + $0x3f0] sm:$0xff]   ;;  %v5725_v47 = vld [vmem:[%s5985_s19 + $0x348] sm:$0xff]   ;;  %v3178_v48 = vadd.f32 %v6481_v8, %v2529_v50  ;;  %v5730_v62 = vld [vmem:[%s5985_s19 + $0x3c0] sm:$0xff]   ;;  %v3255_v44 = vmax.f32 %v3221_v35, 0.0 }
 0xec4   : > { %5369 = vmatpush3.bf16.msra.mxu1 %v5680_v29  ;;  %5348 = vmatprep.subr.bf16.mxu0 %v5681_v16  ;;  %v5707_v16 = vld [vmem:[%s5985_s19 + $0x330] sm:$0xff]   ;;  %v5727_v55 = vld [vmem:[%s5985_s19 + $0x308] sm:$0xff]   ;;  %v5732_v8 = vld [vmem:[%s5985_s19 + $0x380] sm:$0xff]  }
 0xec5   : > { %5370 = vmatprep.subr.bf16.mxu1 %v5682_v18  ;;  %v3254_v4 = vmax.f32 %v3180_v37, 0.0  ;;  %v3256_v5 = vmax.f32 %v3223_v53, 0.0  ;;  %v5708_v18 = vld [vmem:[%s5985_s19 + $0x3b0] sm:$0xff]   ;;  %v3253_v14 = vmax.f32 %v3178_v48, 0.0  ;;  %v3271_v41 = vpack.c.bf16 %v3255_v44, %v3239_v28 }
 0xec7   : > { %5349 = vmatpush3.bf16.msra.mxu0 %v5683_v22  ;;  %v3270_v13 = vpack.c.bf16 %v3254_v4, %v3238_v9  ;;  %v3272_v29 = vpack.c.bf16 %v3256_v5, %v3240_v36  ;;  %v5709_v22 = vld [vmem:[%s5985_s19 + $0x368] sm:$0xff]  }
 0xec8   : > { %5371 = vmatpush3.bf16.msra.mxu1 %v5684_v24  ;;  %5350 = vmatprep.subr.bf16.mxu0 %v5685_v17  ;;  %v5710_v24 = vld [vmem:[%s5985_s19 + $0x3e8] sm:$0xff]  }
 0xec9   : > { %5372 = vmatprep.subr.bf16.mxu1 %v5686_v54  ;;  %v5711_v17 = vld [vmem:[%s5985_s19 + $0x328] sm:$0xff]  }
 0xeca   : > { %v5712_v54 = vld [vmem:[%s5985_s19 + $0x3a8] sm:$0xff]  }
 0xecb   : > { %5351 = vmatpush3.bf16.msra.mxu0 %v5687_v26  ;;  %v5714_v26 = vld [vmem:[%s5985_s19 + $0x3e0] sm:$0xff]  }
 0xecc   : > { %5373 = vmatpush3.bf16.msra.mxu1 %v5688_v27  ;;  %5352 = vmatprep.subr.bf16.mxu0 %v5689_v33  ;;  %v5716_v27 = vld [vmem:[%s5985_s19 + $0x3a0] sm:$0xff]   ;;  %v5717_v33 = vld [vmem:[%s5985_s19 + $0x358] sm:$0xff]  }
 0xecd   : > { %5374 = vmatprep.subr.bf16.mxu1 %v5690_v34  ;;  %v5718_v34 = vld [vmem:[%s5985_s19 + $0x3d8] sm:$0xff]  }
 0xecf   : > { %5353 = vmatpush3.bf16.msra.mxu0 %v5691_v40  ;;  %v5719_v40 = vld [vmem:[%s5985_s19 + $0x318] sm:$0xff]  }
 0xed0   : > { %5375 = vmatpush3.bf16.msra.mxu1 %v5692_v42  ;;  %5354 = vmatprep.subr.bf16.mxu0 %v5693_v45  ;;  %v5720_v42 = vld [vmem:[%s5985_s19 + $0x398] sm:$0xff]   ;;  %v5721_v45 = vld [vmem:[%s5985_s19 + $0x350] sm:$0xff]  }
 0xed1   : > { %5376 = vmatprep.subr.bf16.mxu1 %v5694_v46  ;;  %v5722_v46 = vld [vmem:[%s5985_s19 + $0x3d0] sm:$0xff]  }
 0xed3   : > { %5355 = vmatpush3.bf16.msra.mxu0 %v5695_v49  ;;  %v5726_v49 = vld [vmem:[%s5985_s19 + $0x3c8] sm:$0xff]  }
 0xed4   : > { %5377 = vmatpush3.bf16.msra.mxu1 %v5696_v63  ;;  %5356 = vmatprep.subr.bf16.mxu0 %v5697_v32  ;;  %v5728_v63 = vld [vmem:[%s5985_s19 + $0x388] sm:$0xff]   ;;  %v5729_v32 = vld [vmem:[%s5985_s19 + $0x340] sm:$0xff]  }
 0xed5   : > { %5378 = vmatprep.subr.bf16.mxu1 %v5698_v38  ;;  %v3174_v38 = vadd.f32 %v6469_v39, %v2529_v50 }
 0xed7   : > { %5357 = vmatpush3.bf16.msra.mxu0 %v5699_v59  ;;  %v3237_v37 = vmax.f32 %v3174_v38, 0.0 }
 0xed8   : > { %5379 = vmatpush3.bf16.msra.mxu1 %v5700_v56  ;;  %5386 = vmatprep.subr.bf16.mxu0 %v5701_v1 }
 0xed9   : > { %5408 = vmatprep.subr.bf16.mxu1 %v5702_v3  ;;  %v3269_v53 = vpack.c.bf16 %v3253_v14, %v3237_v37 }
 0xeda   : > { %4501 = vmatmul.mubr.bf16.vlgmr.msra.gmra.mxu0 %v3265_v7  ;;  %v5069_v7 = vld [vmem:[%s733_s21] ss:$0 sm:$0xff] }
 0xedb   : > { %4542 = vmatmul.mubr.bf16.vlgmr.msra.gmra.mxu1 %v3267_v11  ;;  %5387 = vmatpush3.bf16.msra.mxu0 %v5703_v6 }
 0xedc   : > { %4582 = vmatprep.mubr.bf16.mxu0 %v3270_v13  ;;  %5409 = vmatpush3.bf16.msra.mxu1 %v5704_v10 }
 0xedd   : > { %4623 = vmatprep.mubr.bf16.mxu1 %v3272_v29  ;;  %5388 = vmatprep.subr.bf16.mxu0 %v5705_v12 }
 0xede   : > { %5410 = vmatprep.subr.bf16.mxu1 %v5706_v19 }
 0xedf   : > { %5389 = vmatpush3.bf16.msra.mxu0 %v5707_v16 }
 0xee0   : > { %5411 = vmatpush3.bf16.msra.mxu1 %v5708_v18  ;;  %5390 = vmatprep.subr.bf16.mxu0 %v5709_v22 }
 0xee1   : > { %5412 = vmatprep.subr.bf16.mxu1 %v5710_v24 }
 0xee3   : > { %5391 = vmatpush3.bf16.msra.mxu0 %v5711_v17 }
 0xee4   : > { %5413 = vmatpush3.bf16.msra.mxu1 %v5712_v54  ;;  %5392 = vmatprep.subr.bf16.mxu0 %v5713_v25 }
 0xee5   : > { %5414 = vmatprep.subr.bf16.mxu1 %v5714_v26 }
 0xee7   : > { %5393 = vmatpush3.bf16.msra.mxu0 %v5715_v15 }
 0xee8   : > { %5415 = vmatpush3.bf16.msra.mxu1 %v5716_v27  ;;  %5394 = vmatprep.subr.bf16.mxu0 %v5717_v33 }
 0xee9   : > { %5416 = vmatprep.subr.bf16.mxu1 %v5718_v34 }
 0xeeb   : > { %5395 = vmatpush3.bf16.msra.mxu0 %v5719_v40 }
 0xeec   : > { %5417 = vmatpush3.bf16.msra.mxu1 %v5720_v42  ;;  %5396 = vmatprep.subr.bf16.mxu0 %v5721_v45 }
 0xeed   : > { %5418 = vmatprep.subr.bf16.mxu1 %v5722_v46 }
 0xeef   : > { %5397 = vmatpush3.bf16.msra.mxu0 %v5723_v43 }
 0xef0   : > { %5419 = vmatpush3.bf16.msra.mxu1 %v5724_v61  ;;  %5398 = vmatprep.subr.bf16.mxu0 %v5725_v47 }
 0xef1   : > { %5420 = vmatprep.subr.bf16.mxu1 %v5726_v49 }
 0xef3   : > { %5399 = vmatpush3.bf16.msra.mxu0 %v5727_v55 }
 0xef4   : > { %5421 = vmatpush3.bf16.msra.mxu1 %v5728_v63  ;;  %5400 = vmatprep.subr.bf16.mxu0 %v5729_v32 }
 0xef5   : > { %5422 = vmatprep.subr.bf16.mxu1 %v5730_v62 }
 0xef7   : > { %5401 = vmatpush3.bf16.msra.mxu0 %v5731_v57 }
 0xef8   : > { %5423 = vmatpush3.bf16.msra.mxu1 %v5732_v8 }
 0xefa   : > { %4583 = vmatmul.mubr.bf16.vlgmr.msra.gmra.mxu0 %v3269_v53 }
 0xefb   : > { %4624 = vmatmul.mubr.bf16.vlgmr.msra.gmra.mxu1 %v3271_v41 }
 0xf5a   : > { %v5270_v39 = vpop.f32.mrf.mxu0  ;;  %v5292_v59 = vpop.f32.mrf.mxu1 }
 0xf5c   : > { %v5271_v58 = vpop.f32.mrf.mxu0  ;;  %v5293_v23 = vpop.f32.mrf.mxu1 }
 0xf5d   : > { %v5272_v6 = vadd.f32 %v5271_v58, %v5270_v39  ;;  %v5294_v19 = vadd.f32 %v5293_v23, %v5292_v59 }
 0xf5e   : > { %v5273_v60 = vpop.f32.mrf.mxu0  ;;  %v5295_v0 = vpop.f32.mrf.mxu1 }
 0xf5f   : > { %v4339_v11 = vadd.f32 %v5272_v6, %v5069_v7 }
 0xf60   : > { %v5274_v56 = vpop.f32.mrf.mxu0  ;;  %v5296_v30 = vpop.f32.mrf.mxu1 }
 0xf61   : > { %v5275_v36 = vadd.f32 %v5274_v56, %v5273_v60  ;;  %v4380_v16 = vadd.f32 %v5294_v19, %v4339_v11  ;;  %v5297_v17 = vadd.f32 %v5296_v30, %v5295_v0 }
 0xf63   : > { %v4342_v18 = vadd.f32 %v5275_v36, %v5069_v7 }
 0xf65   : > { %v4383_v26 = vadd.f32 %v5297_v17, %v4342_v18 }
 0xf7a   : > { %v5314_v1 = vpop.f32.mrf.mxu0  ;;  %v5336_v2 = vpop.f32.mrf.mxu1 }
 0xf7c   : > { %v5315_v3 = vpop.f32.mrf.mxu0  ;;  %v5337_v20 = vpop.f32.mrf.mxu1 }
 0xf7d   : > { %v5316_v29 = vadd.f32 %v5315_v3, %v5314_v1  ;;  %v5338_v15 = vadd.f32 %v5337_v20, %v5336_v2 }
 0xf7e   : > { %v5317_v4 = vpop.f32.mrf.mxu0  ;;  %v5339_v21 = vpop.f32.mrf.mxu1 }
 0xf7f   : > { %v4421_v54 = vadd.f32 %v5316_v29, %v4380_v16  ;;  %v5199_v29 = vld [vmem:[%s739_s26] ss:$0 sm:$0xff] }
 0xf80   : > { %v5318_v5 = vpop.f32.mrf.mxu0  ;;  %v5340_v10 = vpop.f32.mrf.mxu1 }
 0xf81   : > { %v5319_v25 = vadd.f32 %v5318_v5, %v5317_v4  ;;  %v4462_v40 = vadd.f32 %v5338_v15, %v4421_v54  ;;  %v5341_v45 = vadd.f32 %v5340_v10, %v5339_v21 }
 0xf83   : > { %v4424_v42 = vadd.f32 %v5319_v25, %v4383_v26 }
 0xf85   : > { %v4465_v49 = vadd.f32 %v5341_v45, %v4424_v42 }
 0xf9a   : > { %v5358_v9 = vpop.f32.mrf.mxu0 }
 0xf9b   : > { %v5380_v12 = vpop.f32.mrf.mxu1 }
 0xf9c   : > { %v5359_v13 = vpop.f32.mrf.mxu0 }
 0xf9d   : > { %v5381_v22 = vpop.f32.mrf.mxu1  ;;  %v5360_v27 = vadd.f32 %v5359_v13, %v5358_v9  ;;  %v5198_v13 = vld [vmem:[%s736_s0] ss:$0 sm:$0xff] }
 0xf9e   : > { %v5361_v24 = vpop.f32.mrf.mxu0  ;;  %v5382_v50 = vadd.f32 %v5381_v22, %v5380_v12 }
 0xf9f   : > { %v5383_v33 = vpop.f32.mrf.mxu1  ;;  %v4503_v46 = vadd.f32 %v5360_v27, %v4462_v40 }
 0xfa0   : > { %v5362_v34 = vpop.f32.mrf.mxu0 }
 0xfa1   : > { %v5363_v43 = vadd.f32 %v5362_v34, %v5361_v24  ;;  %v5384_v61 = vpop.f32.mrf.mxu1  ;;  %v4544_v63 = vadd.f32 %v5382_v50, %v4503_v46 }
 0xfa2   : > { %v5385_v31 = vadd.f32 %v5384_v61, %v5383_v33 }
 0xfa3   : > { %v4506_v32 = vadd.f32 %v5363_v43, %v4465_v49 }
 0xfa5   : > { %v4547_v37 = vadd.f32 %v5385_v31, %v4506_v32 }
 0xfba   : > { %v5402_v47 = vpop.f32.mrf.mxu0 }
 0xfbb   : > { %v5424_v55 = vpop.f32.mrf.mxu1 }
 0xfbc   : > { %v5403_v48 = vpop.f32.mrf.mxu0 }
 0xfbd   : > { %v5404_v35 = vadd.f32 %v5403_v48, %v5402_v47  ;;  %v5425_v62 = vpop.f32.mrf.mxu1 }
 0xfbe   : > { %v5405_v38 = vpop.f32.mrf.mxu0  ;;  %v5426_v14 = vadd.f32 %v5425_v62, %v5424_v55 }
 0xfbf   : > { %v4585_v57 = vadd.f32 %v5404_v35, %v4544_v63  ;;  %v5427_v8 = vpop.f32.mrf.mxu1 }
 0xfc0   : > { %v5406_v44 = vpop.f32.mrf.mxu0 }
 0xfc1   : > { %v4626_v28 = vadd.f32 %v5426_v14, %v4585_v57  ;;  %v5407_v53 = vadd.f32 %v5406_v44, %v5405_v38  ;;  %v5428_v41 = vpop.f32.mrf.mxu1 }
 0xfc2   : > { %v5429_v59 = vadd.f32 %v5428_v41, %v5427_v8 }
 0xfc3   : > { %v4588_v39 = vadd.f32 %v5407_v53, %v4547_v37  ;;  %v4632_v58 = vadd.f32 %v4626_v28, %v6263_v51 }
 0xfc5   : > { %v4629_v23 = vadd.f32 %v5429_v59, %v4588_v39  ;;  %v4636_v60 = vsel %vm875_vm4, %v4632_v58, 0.0 }
 0xfc6   : > { %4637 = vadd.xlane.f32.xlu1 %v4636_v60 }
 0xfc7   : > { %v4633_v0 = vadd.f32 %v4629_v23, %v6265_v52 }
 0xfc9   : > { %v4639_v56 = vsel %vm875_vm4, %v4633_v0, 0.0 }
 0xfca   : > { %4640 = vadd.xlane.f32.xlu0 %v4639_v56 }
0x104f   : > { %v4638_v1 = vpop.xlane.xlu1 %4637 }
0x1050   : > { %v4642_v30 = vmul.f32 0.015625, %v4638_v1 }
0x1052   : > { %v4644_v2 = vsub.f32 %v4632_v58, %v4642_v30 }
0x1053   : > { %v4641_v3 = vpop.xlane.xlu0 %4640 }
0x1054   : > { %v4643_v20 = vmul.f32 0.015625, %v4641_v3  ;;  %v4646_v4 = vmul.f32 %v4644_v2, %v4644_v2 }
0x1056   : > { %v4645_v21 = vsub.f32 %v4633_v0, %v4643_v20  ;;  %v4648_v5 = vsel %vm875_vm4, %v4646_v4, 0.0 }
0x1057   : > { %4649 = vadd.xlane.f32.xlu1 %v4648_v5 }
0x1058   : > { %v4647_v51 = vmul.f32 %v4645_v21, %v4645_v21 }
0x105a   : > { %v4651_v6 = vsel %vm875_vm4, %v4647_v51, 0.0 }
0x105b   : > { %4652 = vadd.xlane.f32.xlu0 %v4651_v6 }
0x10e0   : > { %v4650_v52 = vpop.xlane.xlu1 %4649 }
0x10e1   : > { %v4654_v7 = vmul.f32 0.015625, %v4650_v52 }
0x10e3   : > { %v4656_v9 = vadd.f32 1e-05, %v4654_v7 }
0x10e4   : > { %v4653_v10 = vpop.xlane.xlu0 %4652 }
0x10e5   : > { %5769 = vrsqrt.f32 %v4656_v9  ;;  %v4655_v11 = vmul.f32 0.015625, %v4653_v10 }
0x10e7   : > { %v4657_v36 = vadd.f32 1e-05, %v4655_v11 }
0x10e9   : > { %5771 = vrsqrt.f32 %v4657_v36 }
0x10f2   : > { %v5770_v12 = vpop.eup %5769 }
0x10f3   : > { %v4660_v19 = vmul.f32 %v5770_v12, %v4644_v2 }
0x10f5   : > { %v4668_v16 = vmul.f32 %v5198_v13, %v4660_v19 }
0x10f6   : > { %v5772_v18 = vpop.eup %5771 }
0x10f7   : > { %v4676_v22 = vadd.f32 %v5199_v29, %v4668_v16  ;;  %v4661_v24 = vmul.f32 %v5772_v18, %v4645_v21 }
0x10f9   : > { %4678 = vst.msk [vmem:[#allocation2] sm:$0xff] %vm875_vm4, %v4676_v22  ;;  %v4669_v17 = vmul.f32 %v5198_v13, %v4661_v24  ;;  %4683 = sbr.rel (%p5200_p5) target bundleno = 4566 (0x11d6), region = 100 }
0x10fb   : > { %v4677_v54 = vadd.f32 %v5199_v29, %v4669_v17 }
0x10fd   : > { %4679 = vst.msk [vmem:[#allocation2 + $0x8] sm:$0xff] %vm875_vm4, %v4677_v54 }
0x10fe   : > { %v5775_v25 = vld [vmem:[%s6650_s23 + $0x18] sm:$0xff]   ;;  %v4684_v26 = vpack.c.bf16 %v4676_v22, %v4676_v22  ;;  %v4685_v15 = vpack.c.bf16 %v4677_v54, %v4677_v54  ;;  %v5827_v27 = vmov 0.0   ;;  %v5776_v33 = vld [vmem:[%s6650_s23 + $0x10] sm:$0xff]   ;;  %vm5828_vm10 = vmmov 0   ;;  %v5777_v42 = vld [vmem:[%s6650_s23 + $0x8] sm:$0xff]  }
0x10ff   : > { %5533 = vmatprep.subr.bf16.mxu0 %v5827_v27  ;;  %5541 = vmatprep.mubr.msk.bf16.mxu0 %vm5828_vm10, %v5827_v27  ;;  %vm4707_vm11 = vcmask 1041409   ;;  %v5778_v43 = vld [vmem:[%s6650_s23] sm:$0xff]   ;;  %vm4777_vm12 = vcmask 25600  }
0x1100   : > { %5534 = vmatpush3.bf16.msra.mxu0 %v5775_v25  ;;  %v4703_v34 = vunpack.c.l.b16 %v4684_v26  ;;  %v4704_v40 = vunpack.c.l.b16 %v4685_v15  ;;  %v5201_v49 = vld [vmem:[%s6651_s5] ss:$0 sm:$0xff] }
0x1101   : > { %5535 = vmatprep.subr.bf16.mxu0 %v5827_v27 }
0x1102   : > { %v4705_v45 = vrot.slane %v4703_v34, 7  ;;  %v4706_v46 = vrot.slane %v4704_v40, 6 }
0x1104   : > { %5536 = vmatpush3.bf16.msra.mxu0 %v5776_v33  ;;  %v4708_v61 = vsel %vm4707_vm11, %v4706_v46, %v4705_v45 }
0x1105   : > { %5537 = vmatprep.subr.bf16.mxu0 %v5827_v27  ;;  %v4709_v47 = vpack.c.b16 %v4708_v61, %v4708_v61 }
0x1108   : > { %5538 = vmatpush3.bf16.msra.mxu0 %v5777_v42 }
0x1109   : > { %5539 = vmatprep.subr.bf16.mxu0 %v5827_v27 }
0x110c   : > { %5540 = vmatpush3.bf16.msra.mxu0 %v5778_v43 }
0x110f   : > { %5542 = vmatmul.mubr.msk.bf16.vlgmr.msra.gmra.mxu0 %vm875_vm4, %v4709_v47 }
0x11cf   : > { %v4771_v50 = vpop.f32.mrf.mxu0 }
0x11d0   : > { %v4772_v55 = vadd.f32 %v5201_v49, %v4771_v50 }
0x11d1   : > { %v5543_v48 = vpop.f32.mrf.mxu0 }
0x11d2   : > { %4778 = vst.msk [vmem:[#allocation3] sm:$0x3] %vm4777_vm12, %v4772_v55 }
0x11d3   : > { %v4774_v63 = vpop.f32.mrf.mxu0 }
0x11d5   : > { %v5544_v32 = vpop.f32.mrf.mxu0 }
0x11d6 PF: > { %p5549_p6 = scmp.eq.s32.totalorder %s5931_s28, 1  ;;  %s5829_s2 = smov [#allocation3]  }
0x11d7   : > { %s4786_s18 = sshll.u32 %s5829_s2, 4  ;;  %s4787_s18 = int_to_ptr.vmem [resolvable:$true] %s4786_s18 }
0x11d8   : > { %s5779_s21 = scalar_lea.vmem %s4787_s18, 32  ;;  %p5786_p10 = scmp.lt.s32.totalorder %s4787_s18, %s4787_s18 }
0x11d9   : > { %p5780_p7 = scmp.ne.s32.totalorder %s4787_s18, %s5779_s21  ;;  %p5787_p11 = scmp.lt.s32.totalorder %s5779_s21, %s5779_s21 }
0x11db   : > { %p5781_p8 = pnand %p5780_p7, %p5549_p6  ;;  %p5788_p12 = por %p5787_p11, %p5786_p10 }
0x11dd   : > { %p5782_p9 = pneg %p5781_p8 }
0x11df   : > { %p5789_p13 = pnand %p5788_p12, %p5782_p9 }
0x11e1   : > { %5792 = shalt.err (!%p5789_p13)
}
0x11e2   : > { %s6652_s24 = sld [smem:[#allocation16_spill]] }
0x11e8   : > { %5546 = dma.vmem_to_hbm [thread:$0]  (%p5549_p6), %s4787_s18, 32, %s6652_s24, [#allocation4]  }
0x11e9   : > { %5808 = dma.done.wait (%p5549_p6), [#allocation4], 32  }
0x11ea   : > { %5810 = vsyncadd (%p5549_p6), [#allocation4], 4294967264 }
0x11eb PF: > { %s6653_s0 = sld [smem:[#allocation6_spill]] }
0x11f1   : > { %s29_s27 = sadd.s32 1, %s6653_s0  }
0x11f2   : > { %p26_p0 = scmp.ge.s32.totalorder %s29_s27, 4  }
0x11f4   :  { %28 = sbr.rel (!%p26_p0) target bundleno = 11 (0xb), region = 160 }
0x11f9   :  { %4799 = vsyncpa [#allocation4], 1 }
0x11fa   :  { %4801 = vsyncpa [#allocation4 + $0x1], 1 }

</bundles_post_ra>
